<compile_context>
chip_gen: v5e
topology: v5e:2x2
jax: 0.10.0
libtpu: 0.0.40
codegen_flags: <defaults>
</compile_context>

<pallas_src>
import functools
import numpy as np
import jax
import jax.numpy as jnp
from jax import lax
from jax.experimental import pallas as pl
from jax.experimental.pallas import tpu as pltpu


# ----------------------------------------------------------------------------
# Buffer construction (mirrors LMUFFT.__init__): state-space matrices, impulse
# ----------------------------------------------------------------------------
def _expm(M):
    """float64 scaling-and-squaring matrix exponential (avoids scipy dep)."""
    M = np.asarray(M, dtype=np.float64)
    nrm = np.linalg.norm(M, ord=1)
    s = 0 if nrm == 0 else max(0, int(np.ceil(np.log2(nrm))) + 1)
    A = M / (2.0 ** s)
    E = np.eye(M.shape[0], dtype=np.float64)
    term = np.eye(M.shape[0], dtype=np.float64)
    for k in range(1, 25):
        term = term @ A / k
        E = E + term
    for _ in range(s):
        E = E @ E
    return E


def state_space_matrices(memory_size, theta):
    """Discretized LMU state-space matrices (cont2discrete, method='zoh', dt=1)."""
    Q = np.arange(memory_size, dtype=np.float64).reshape(-1, 1)
    R = (2 * Q + 1) / theta
    i, j = np.meshgrid(Q, Q, indexing="ij")
    A = R * np.where(i < j, -1, (-1.0) ** (i - j + 1))
    B = R * (-1.0) ** Q
    n = memory_size
    M = np.zeros((n + 1, n + 1), dtype=np.float64)
    M[:n, :n] = A
    M[:n, n:] = B
    EM = _expm(M * 1.0)                 # dt = 1.0
    Ad = EM[:n, :n].astype(np.float32)
    Bd = EM[:n, n:].astype(np.float32)
    return Ad, Bd


def impulse(A, B, seq_len):
    """H[:, t] = A^t @ B, t in [0, seq_len)  -> [memory_size, seq_len]."""
    Md = A.shape[0]
    H = np.zeros((Md, seq_len), dtype=np.float32)
    A64 = A.astype(np.float64)
    B64 = B.astype(np.float64)
    A_i = np.eye(Md, dtype=np.float64)
    for t in range(seq_len):
        H[:, t] = (A_i @ B64)[:, 0].astype(np.float32)
        A_i = A64 @ A_i
    return H


def _round_up(n, m):
    return ((n + m - 1) // m) * m


# ----------------------------------------------------------------------------
# Kernel
# ----------------------------------------------------------------------------
def _toeplitz_of_u(xr_ref, wu_ref, bu_ref):
    """Builds tu_flat[b*SP + t, s] = u[b, t-s] for t >= s else 0, in bf16.

    xr[b, i, s] = x[b, SP-1-s, i] (wrapper-side flip+transpose), so
    u_rev[b, s] = u[b, SP-1-s] is computed lane-densely and no in-kernel
    reversal is needed.  The Toeplitz is built with ONE strided pltpu.roll
    (per-row lane rotation) plus a single triangular mask.
    """
    TB, I, SP = xr_ref.shape

    # u_rev = ReLU(W_u x + b_u), time-reversed, lane-dense over SP.
    acc = jnp.zeros((TB, SP), jnp.float32)
    for i in range(I):                                   # I is tiny (e.g. 8)
        acc = acc + xr_ref[:, i, :] * wu_ref[0, i]
    u_rev = jnp.maximum(acc + bu_ref[0, 0], 0.0)         # [TB, SP] f32

    # Broadcast each batch's reversed u over its SP output rows and rotate row
    # r = b*SP + t by (1 + r) lanes: lane s of row r then holds u[b, t - s]
    # (modulo SP; the wrap-around lanes are exactly the s > t entries).
    rows = jnp.broadcast_to(u_rev[:, None, :], (TB, SP, SP)).reshape(TB * SP, SP)
    rolled = pltpu.roll(rows, shift=1, axis=1, stride=1, stride_axis=0)

    # Causal (lower-triangular) mask: keep lanes s <= t, zero the wrap-around.
    t_idx = lax.broadcasted_iota(jnp.int32, (TB, SP, SP), 1).reshape(TB * SP, SP)
    s_idx = lax.broadcasted_iota(jnp.int32, (TB * SP, SP), 1)
    tu = jnp.where(t_idx >= s_idx, rolled, 0.0).astype(jnp.bfloat16)
    return tu                                            # [TB*SP, SP] bf16


def _lmufft_kernel(xr_ref, x_ref, wu_ref, bu_ref, *rest, fold_memory):
    if fold_memory:
        g_ref, whx_ref, bh_ref, h_ref = rest
    else:
        ht_ref, whm_ref, whx_ref, bh_ref, h_ref = rest
    TB, SP, I = x_ref.shape

    tu = _toeplitz_of_u(xr_ref, wu_ref, bu_ref)          # [TB*SP, SP] bf16
    x_flat = x_ref[...].reshape(TB * SP, I).astype(jnp.bfloat16)

    if fold_memory:
        # h_mem = Toeplitz(u) @ (H^T W_hm^T)  -- memory matmul folded away.
        h = jnp.dot(tu, g_ref[...], preferred_element_type=jnp.float32)
    else:
        # m = Toeplitz(u) @ H^T ; h_mem = m @ W_hm^T
        m = jnp.dot(tu, ht_ref[...], preferred_element_type=jnp.float32)
        h = jnp.dot(m.astype(jnp.bfloat16), whm_ref[...],
                    preferred_element_type=jnp.float32)
    h = h + jnp.dot(x_flat, whx_ref[...], preferred_element_type=jnp.float32)
    h = h + bh_ref[...]
    h_ref[...] = jnp.maximum(h, 0.0)                     # [TB*SP, HP] lane-dense


# ----------------------------------------------------------------------------
# Wrapper
# ----------------------------------------------------------------------------
def _choose_block_b(batch, bytes_per_batch, vmem_budget):
    """Largest batch tile that fits the VMEM budget, keeps >= 2 grid steps
    (so the 'parallel' axis shards across both v7x TensorCores) and divides
    the batch (no padding waste) when possible."""
    tb = max(1, min(batch, int(vmem_budget // max(bytes_per_batch, 1))))
    if batch >= 2:
        tb = min(tb, batch // 2)
    while tb > 1 and batch % tb != 0:
        tb -= 1
    return max(tb, 1)


def lmufft_forward(x, wu_w, wu_b, wh_w, wh_b, H, *, block_b=None,
                   vmem_budget_bytes=20 * 1024 * 1024):
    """LMUFFT forward.  Parameters use the PyTorch module's layout:
       wu_w [1, I], wu_b [1], wh_w [Hd, Md+I], wh_b [Hd], H [Md, S]."""
    B, S, I = x.shape
    Hd = wh_w.shape[0]
    Md = H.shape[0]
    SP = _round_up(S, 128)       # lane-native sequence axis (roll + MXU tiles)
    MP = _round_up(Md, 128)      # lane-padded memory axis
    HP = _round_up(Hd, 128)      # lane-padded hidden axis (lane-dense stores)
    fold_memory = HP <= MP       # fold W_h memory half into H^T (drops `m`)

    # --- explicit VMEM budgeting / batch-tile selection ---------------------
    bytes_per_batch = (
        2 * SP * I * 4 * 2                 # x + xr input blocks, double-buffered
        + SP * HP * 4 * 2                  # output block, double-buffered
        + SP * SP * (4 + 4 + 2)            # Toeplitz build transients (f32 + bf16)
        + SP * HP * 4                      # f32 matmul accumulator
        + (0 if fold_memory else SP * MP * 4)   # `m` intermediate
    )
    if block_b is None:
        block_b = _choose_block_b(B, bytes_per_batch, vmem_budget_bytes)
    TB = max(1, min(block_b, B))
    B_pad = _round_up(B, TB)               # ragged batch: pad, slice off below

    # --- parameter / input slabs (wrapper-side layout plumbing only) --------
    x = x.astype(jnp.float32)
    if S != SP or B_pad != B:
        x = jnp.pad(x, ((0, B_pad - B), (0, SP - S), (0, 0)))
    xr = jnp.transpose(jnp.flip(x, axis=1), (0, 2, 1))   # [B_pad, I, SP]

    wu = wu_w.reshape(1, I).astype(jnp.float32)          # SMEM scalars
    bu = wu_b.reshape(1, 1).astype(jnp.float32)          # SMEM scalar
    whx = jnp.zeros((I, HP), jnp.bfloat16).at[:, :Hd].set(
        jnp.asarray(wh_w[:, Md:], jnp.float32).T.astype(jnp.bfloat16))
    bh = jnp.zeros((1, HP), jnp.float32).at[:, :Hd].set(
        wh_b.reshape(1, Hd).astype(jnp.float32))
    H32 = jnp.asarray(H, jnp.float32)                     # [Md, S]

    if fold_memory:
        # G = H^T @ W_hm^T  (f32 in the wrapper, cast to bf16), rows >= S zero.
        g = jnp.zeros((SP, HP), jnp.float32).at[:S, :Hd].set(
            (jnp.asarray(wh_w[:, :Md], jnp.float32) @ H32).T).astype(jnp.bfloat16)
        mats = (g, whx)
        mat_specs = [pl.BlockSpec((SP, HP), lambda b: (0, 0)),
                     pl.BlockSpec((I, HP), lambda b: (0, 0))]
    else:
        ht = jnp.zeros((SP, MP), jnp.bfloat16).at[:S, :Md].set(
            H32.T.astype(jnp.bfloat16))
        whm = jnp.zeros((MP, HP), jnp.bfloat16).at[:Md, :Hd].set(
            jnp.asarray(wh_w[:, :Md], jnp.float32).T.astype(jnp.bfloat16))
        mats = (ht, whm, whx)
        mat_specs = [pl.BlockSpec((SP, MP), lambda b: (0, 0)),
                     pl.BlockSpec((MP, HP), lambda b: (0, 0)),
                     pl.BlockSpec((I, HP), lambda b: (0, 0))]

    # Honest cost hint with the padded dims actually computed.
    flops = int(2 * B_pad * SP * (I + I * HP +
                                  (SP * HP if fold_memory else SP * MP + MP * HP)))
    bytes_accessed = int(2 * x.size * 4 + B_pad * SP * HP * 4
                         + sum(int(np.prod(a.shape)) for a in mats) * 2
                         + bh.size * 4 + wu.size * 4 + bu.size * 4)

    kernel = functools.partial(_lmufft_kernel, fold_memory=fold_memory)
    h_flat = pl.pallas_call(
        kernel,
        out_shape=jax.ShapeDtypeStruct((B_pad * SP, HP), jnp.float32),
        grid=(B_pad // TB,),
        in_specs=[
            pl.BlockSpec((TB, I, SP), lambda b: (b, 0, 0)),        # x (flipped, T)
            pl.BlockSpec((TB, SP, I), lambda b: (b, 0, 0)),        # x
            pl.BlockSpec(memory_space=pltpu.MemorySpace.SMEM),     # W_u scalars
            pl.BlockSpec(memory_space=pltpu.MemorySpace.SMEM),     # b_u scalar
            *mat_specs,                                            # constant slabs
            pl.BlockSpec((1, HP), lambda b: (0, 0)),               # b_h
        ],
        out_specs=pl.BlockSpec((TB * SP, HP), lambda b: (b, 0)),
        compiler_params=pltpu.CompilerParams(
            dimension_semantics=("parallel",),
            vmem_limit_bytes=48 * 1024 * 1024),
        cost_estimate=pl.CostEstimate(flops=flops, transcendentals=0,
                                      bytes_accessed=bytes_accessed),
    )(xr, x, wu, bu, *mats, bh)

    # Strip batch / time / lane padding (layout plumbing only).
    h = h_flat.reshape(B_pad, SP, HP)[:B, :S, :Hd]
    return h, h[:, -1, :]


# ----------------------------------------------------------------------------
# NumPy float64 reference (FFT path, mirrors the PyTorch forward exactly)
# ----------------------------------------------------------------------------
def lmufft_reference(x, wu_w, wu_b, wh_w, wh_b, H):
    x = np.asarray(x, np.float64)
    wu_w = np.asarray(wu_w, np.float64)
    wu_b = np.asarray(wu_b, np.float64)
    wh_w = np.asarray(wh_w, np.float64)
    wh_b = np.asarray(wh_b, np.float64)
    H = np.asarray(H, np.float64)
    B, S, I = x.shape
    u = np.maximum(x @ wu_w.T + wu_b, 0.0)                       # [B, S, 1]
    fft_H = np.fft.rfft(H, n=2 * S, axis=-1)                     # [Md, S+1]
    fft_u = np.fft.rfft(np.transpose(u, (0, 2, 1)), n=2 * S, axis=-1)
    m = np.fft.irfft(fft_u * fft_H[None], n=2 * S, axis=-1)[:, :, :S]
    m = np.transpose(m, (0, 2, 1))                               # [B, S, Md]
    h = np.maximum(np.concatenate([m, x], axis=-1) @ wh_w.T + wh_b, 0.0)
    return h.astype(np.float32), h[:, -1, :].astype(np.float32)


if __name__ == "__main__":
    # Small but lane-native shapes consistent with the module's forward
    # (input_size/memory_size/hidden_size/theta from the spec, shorter seq).
    B, S, I = 8, 128, 8          # batch, seq_len, input_size
    Md, Hd = 32, 32              # memory_size, hidden_size
    theta = 512.0

    # Fixed buffers A, B, H (same construction as LMUFFT.__init__).
    A, Bm = state_space_matrices(Md, theta)
    H = impulse(A, Bm, S)                        # [Md, S]

    # Deterministic parameter init (PyTorch Linear-style uniform bounds).
    key = jax.random.PRNGKey(0)
    k1, k2, k3, k4, kx = jax.random.split(key, 5)
    bu_bound = 1.0 / np.sqrt(I)
    wu_w = jax.random.uniform(k1, (1, I), jnp.float32, -bu_bound, bu_bound)
    wu_b = jax.random.uniform(k2, (1,), jnp.float32, -bu_bound, bu_bound)
    bh_bound = 1.0 / np.sqrt(Md + I)
    wh_w = jax.random.uniform(k3, (Hd, Md + I), jnp.float32, -bh_bound, bh_bound)
    wh_b = jax.random.uniform(k4, (Hd,), jnp.float32, -bh_bound, bh_bound)
    x = jax.random.normal(kx, (B, S, I), jnp.float32)

    h, h_n = lmufft_forward(x, wu_w, wu_b, wh_w, wh_b, jnp.asarray(H))
    jax.block_until_ready((h, h_n))

    # Cross-check against the float64 FFT reference (bf16 MXU -> loose tol).
    h_ref, hn_ref = lmufft_reference(x, wu_w, wu_b, wh_w, wh_b, H)
    np.testing.assert_allclose(np.asarray(h), h_ref, rtol=2e-2, atol=2e-2)
    np.testing.assert_allclose(np.asarray(h_n), hn_ref, rtol=2e-2, atol=2e-2)

    print("KERNEL_OK")
</pallas_src>

<mosaic_0001>
module attributes {stable_mosaic.version = 11 : i64} {
  func.func @_lmufft_kernel(%arg0: i32, %arg1: memref<4x8x128xf32, #tpu.memory_space<vmem>>, %arg2: memref<4x128x8xf32, #tpu.memory_space<vmem>>, %arg3: memref<1x8xf32, #tpu.memory_space<smem>>, %arg4: memref<1x1xf32, #tpu.memory_space<smem>>, %arg5: memref<128x128xbf16, #tpu.memory_space<vmem>>, %arg6: memref<8x128xbf16, #tpu.memory_space<vmem>>, %arg7: memref<1x128xf32, #tpu.memory_space<vmem>>, %arg8: memref<512x128xf32, #tpu.memory_space<vmem>>) attributes {dimension_semantics = [#tpu.dimension_semantics<parallel>], iteration_bounds = array<i64: 2>, scalar_prefetch = 0 : i64, scratch_operands = 0 : i64, tpu.core_type = #tpu.core_type<tc>, window_params = [{transform_indices = @transform_0, window_bounds = array<i64: 4, 8, 128>}, {transform_indices = @transform_1, window_bounds = array<i64: 4, 128, 8>}, {transform_indices = @transform_2, window_bounds = array<i64: 1, 8>}, {transform_indices = @transform_3, window_bounds = array<i64: 1, 1>}, {pipeline_mode = #tpu.pipeline_mode<synchronous>, transform_indices = @transform_4, window_bounds = array<i64: 128, 128>}, {pipeline_mode = #tpu.pipeline_mode<synchronous>, transform_indices = @transform_5, window_bounds = array<i64: 8, 128>}, {pipeline_mode = #tpu.pipeline_mode<synchronous>, transform_indices = @transform_6, window_bounds = array<i64: 1, 128>}, {transform_indices = @transform_7, window_bounds = array<i64: 512, 128>}]} {
    %cst = arith.constant 0.000000e+00 : f32
    %0 = vector.broadcast %cst : f32 to vector<4x128xf32>
    %c0 = arith.constant 0 : index
    %c0_0 = arith.constant 0 : index
    %c0_1 = arith.constant 0 : index
    %1 = vector.load %arg1[%c0, %c0_0, %c0_1] : memref<4x8x128xf32, #tpu.memory_space<vmem>>, vector<4x1x128xf32>
    %2 = vector.shape_cast %1 : vector<4x1x128xf32> to vector<4x128xf32>
    %c0_2 = arith.constant 0 : index
    %c0_3 = arith.constant 0 : index
    %3 = memref.load %arg3[%c0_2, %c0_3] : memref<1x8xf32, #tpu.memory_space<smem>>
    %4 = vector.broadcast %3 : f32 to vector<4x128xf32>
    %5 = arith.mulf %2, %4 : vector<4x128xf32>
    %6 = arith.addf %0, %5 : vector<4x128xf32>
    %c0_4 = arith.constant 0 : index
    %c1 = arith.constant 1 : index
    %c0_5 = arith.constant 0 : index
    %7 = vector.load %arg1[%c0_4, %c1, %c0_5] : memref<4x8x128xf32, #tpu.memory_space<vmem>>, vector<4x1x128xf32>
    %8 = vector.shape_cast %7 : vector<4x1x128xf32> to vector<4x128xf32>
    %c0_6 = arith.constant 0 : index
    %c1_7 = arith.constant 1 : index
    %9 = memref.load %arg3[%c0_6, %c1_7] : memref<1x8xf32, #tpu.memory_space<smem>>
    %10 = vector.broadcast %9 : f32 to vector<4x128xf32>
    %11 = arith.mulf %8, %10 : vector<4x128xf32>
    %12 = arith.addf %6, %11 : vector<4x128xf32>
    %c0_8 = arith.constant 0 : index
    %c2 = arith.constant 2 : index
    %c0_9 = arith.constant 0 : index
    %13 = vector.load %arg1[%c0_8, %c2, %c0_9] : memref<4x8x128xf32, #tpu.memory_space<vmem>>, vector<4x1x128xf32>
    %14 = vector.shape_cast %13 : vector<4x1x128xf32> to vector<4x128xf32>
    %c0_10 = arith.constant 0 : index
    %c2_11 = arith.constant 2 : index
    %15 = memref.load %arg3[%c0_10, %c2_11] : memref<1x8xf32, #tpu.memory_space<smem>>
    %16 = vector.broadcast %15 : f32 to vector<4x128xf32>
    %17 = arith.mulf %14, %16 : vector<4x128xf32>
    %18 = arith.addf %12, %17 : vector<4x128xf32>
    %c0_12 = arith.constant 0 : index
    %c3 = arith.constant 3 : index
    %c0_13 = arith.constant 0 : index
    %19 = vector.load %arg1[%c0_12, %c3, %c0_13] : memref<4x8x128xf32, #tpu.memory_space<vmem>>, vector<4x1x128xf32>
    %20 = vector.shape_cast %19 : vector<4x1x128xf32> to vector<4x128xf32>
    %c0_14 = arith.constant 0 : index
    %c3_15 = arith.constant 3 : index
    %21 = memref.load %arg3[%c0_14, %c3_15] : memref<1x8xf32, #tpu.memory_space<smem>>
    %22 = vector.broadcast %21 : f32 to vector<4x128xf32>
    %23 = arith.mulf %20, %22 : vector<4x128xf32>
    %24 = arith.addf %18, %23 : vector<4x128xf32>
    %c0_16 = arith.constant 0 : index
    %c4 = arith.constant 4 : index
    %c0_17 = arith.constant 0 : index
    %25 = vector.load %arg1[%c0_16, %c4, %c0_17] : memref<4x8x128xf32, #tpu.memory_space<vmem>>, vector<4x1x128xf32>
    %26 = vector.shape_cast %25 : vector<4x1x128xf32> to vector<4x128xf32>
    %c0_18 = arith.constant 0 : index
    %c4_19 = arith.constant 4 : index
    %27 = memref.load %arg3[%c0_18, %c4_19] : memref<1x8xf32, #tpu.memory_space<smem>>
    %28 = vector.broadcast %27 : f32 to vector<4x128xf32>
    %29 = arith.mulf %26, %28 : vector<4x128xf32>
    %30 = arith.addf %24, %29 : vector<4x128xf32>
    %c0_20 = arith.constant 0 : index
    %c5 = arith.constant 5 : index
    %c0_21 = arith.constant 0 : index
    %31 = vector.load %arg1[%c0_20, %c5, %c0_21] : memref<4x8x128xf32, #tpu.memory_space<vmem>>, vector<4x1x128xf32>
    %32 = vector.shape_cast %31 : vector<4x1x128xf32> to vector<4x128xf32>
    %c0_22 = arith.constant 0 : index
    %c5_23 = arith.constant 5 : index
    %33 = memref.load %arg3[%c0_22, %c5_23] : memref<1x8xf32, #tpu.memory_space<smem>>
    %34 = vector.broadcast %33 : f32 to vector<4x128xf32>
    %35 = arith.mulf %32, %34 : vector<4x128xf32>
    %36 = arith.addf %30, %35 : vector<4x128xf32>
    %c0_24 = arith.constant 0 : index
    %c6 = arith.constant 6 : index
    %c0_25 = arith.constant 0 : index
    %37 = vector.load %arg1[%c0_24, %c6, %c0_25] : memref<4x8x128xf32, #tpu.memory_space<vmem>>, vector<4x1x128xf32>
    %38 = vector.shape_cast %37 : vector<4x1x128xf32> to vector<4x128xf32>
    %c0_26 = arith.constant 0 : index
    %c6_27 = arith.constant 6 : index
    %39 = memref.load %arg3[%c0_26, %c6_27] : memref<1x8xf32, #tpu.memory_space<smem>>
    %40 = vector.broadcast %39 : f32 to vector<4x128xf32>
    %41 = arith.mulf %38, %40 : vector<4x128xf32>
    %42 = arith.addf %36, %41 : vector<4x128xf32>
    %c0_28 = arith.constant 0 : index
    %c7 = arith.constant 7 : index
    %c0_29 = arith.constant 0 : index
    %43 = vector.load %arg1[%c0_28, %c7, %c0_29] : memref<4x8x128xf32, #tpu.memory_space<vmem>>, vector<4x1x128xf32>
    %44 = vector.shape_cast %43 : vector<4x1x128xf32> to vector<4x128xf32>
    %c0_30 = arith.constant 0 : index
    %c7_31 = arith.constant 7 : index
    %45 = memref.load %arg3[%c0_30, %c7_31] : memref<1x8xf32, #tpu.memory_space<smem>>
    %46 = vector.broadcast %45 : f32 to vector<4x128xf32>
    %47 = arith.mulf %44, %46 : vector<4x128xf32>
    %48 = arith.addf %42, %47 : vector<4x128xf32>
    %c0_32 = arith.constant 0 : index
    %c0_33 = arith.constant 0 : index
    %49 = memref.load %arg4[%c0_32, %c0_33] : memref<1x1xf32, #tpu.memory_space<smem>>
    %50 = vector.broadcast %49 : f32 to vector<4x128xf32>
    %51 = arith.addf %48, %50 : vector<4x128xf32>
    %cst_34 = arith.constant 0.000000e+00 : f32
    %52 = vector.broadcast %cst_34 : f32 to vector<4x128xf32>
    %53 = arith.maximumf %51, %52 : vector<4x128xf32>
    %54 = vector.shape_cast %53 : vector<4x128xf32> to vector<4x1x128xf32>
    %55 = vector.shape_cast %54 : vector<4x1x128xf32> to vector<4x1x128xf32>
    %56 = vector.broadcast %55 : vector<4x1x128xf32> to vector<4x128x128xf32>
    %57 = vector.shape_cast %56 : vector<4x128x128xf32> to vector<512x128xf32>
    %c1_i32 = arith.constant 1 : i32
    %58 = tpu.dynamic_rotate %57 by %c1_i32 dim 1 {stride = 1 : si32, stride_dimension = 0 : si32} : vector<512x128xf32>, i32 -> vector<512x128xf32>
    %59 = tpu.iota {dimensions = array<i32: 1>} : vector<4x128x128xi32>
    %60 = vector.shape_cast %59 : vector<4x128x128xi32> to vector<512x128xi32>
    %61 = tpu.iota {dimensions = array<i32: 1>} : vector<512x128xi32>
    %62 = arith.cmpi sge, %60, %61 : vector<512x128xi32>
    %cst_35 = arith.constant 0.000000e+00 : f32
    %63 = vector.broadcast %cst_35 : f32 to vector<512x128xf32>
    %64 = arith.select %62, %58, %63 : vector<512x128xi1>, vector<512x128xf32>
    %65 = arith.truncf %64 : vector<512x128xf32> to vector<512x128xbf16>
    %c0_36 = arith.constant 0 : index
    %c0_37 = arith.constant 0 : index
    %c0_38 = arith.constant 0 : index
    %66 = vector.load %arg2[%c0_36, %c0_37, %c0_38] : memref<4x128x8xf32, #tpu.memory_space<vmem>>, vector<4x128x8xf32>
    %67 = vector.shape_cast %66 : vector<4x128x8xf32> to vector<512x8xf32>
    %68 = arith.truncf %67 : vector<512x8xf32> to vector<512x8xbf16>
    %c0_39 = arith.constant 0 : index
    %c0_40 = arith.constant 0 : index
    %69 = vector.load %arg5[%c0_39, %c0_40] : memref<128x128xbf16, #tpu.memory_space<vmem>>, vector<128x128xbf16>
    %cst_41 = arith.constant dense<0.000000e+00> : vector<512x128xf32>
    %70 = tpu.matmul %65, %69, %cst_41 {dimension_numbers = #tpu.dot_dimension_numbers<[1], [0], [0], [1], [0, 0, 1, 1], [], []>} : vector<512x128xbf16>, vector<128x128xbf16>, vector<512x128xf32> -> vector<512x128xf32>
    %c0_42 = arith.constant 0 : index
    %c0_43 = arith.constant 0 : index
    %71 = vector.load %arg6[%c0_42, %c0_43] : memref<8x128xbf16, #tpu.memory_space<vmem>>, vector<8x128xbf16>
    %cst_44 = arith.constant dense<0.000000e+00> : vector<512x128xf32>
    %72 = tpu.matmul %68, %71, %cst_44 {dimension_numbers = #tpu.dot_dimension_numbers<[1], [0], [0], [1], [0, 0, 1, 1], [], []>} : vector<512x8xbf16>, vector<8x128xbf16>, vector<512x128xf32> -> vector<512x128xf32>
    %73 = arith.addf %70, %72 : vector<512x128xf32>
    %c0_45 = arith.constant 0 : index
    %c0_46 = arith.constant 0 : index
    %74 = vector.load %arg7[%c0_45, %c0_46] : memref<1x128xf32, #tpu.memory_space<vmem>>, vector<1x128xf32>
    %75 = vector.broadcast %74 : vector<1x128xf32> to vector<512x128xf32>
    %76 = arith.addf %73, %75 : vector<512x128xf32>
    %cst_47 = arith.constant 0.000000e+00 : f32
    %77 = vector.broadcast %cst_47 : f32 to vector<512x128xf32>
    %78 = arith.maximumf %76, %77 : vector<512x128xf32>
    %c0_48 = arith.constant 0 : index
    %c0_49 = arith.constant 0 : index
    %79 = vector.load %arg8[%c0_48, %c0_49] : memref<512x128xf32, #tpu.memory_space<vmem>>, vector<512x128xf32>
    tpu.vector_store %arg8[%c0_48, %c0_49], %78 {strides = array<i32>} : memref<512x128xf32, #tpu.memory_space<vmem>>, vector<512x128xf32>,
    return
  }
  func.func @transform_0(%arg0: i32) -> (i32, i32, i32) {
    %c0_i32 = arith.constant 0 : i32
    %c0_i32_0 = arith.constant 0 : i32
    %c0_i32_1 = arith.constant 0 : i32
    return %arg0, %c0_i32, %c0_i32_0 : i32, i32, i32
  }
  func.func @transform_1(%arg0: i32) -> (i32, i32, i32) {
    %c0_i32 = arith.constant 0 : i32
    %c0_i32_0 = arith.constant 0 : i32
    %c0_i32_1 = arith.constant 0 : i32
    return %arg0, %c0_i32, %c0_i32_0 : i32, i32, i32
  }
  func.func @transform_2(%arg0: i32) -> (i32, i32) {
    %c0_i32 = arith.constant 0 : i32
    %c0_i32_0 = arith.constant 0 : i32
    %c0_i32_1 = arith.constant 0 : i32
    return %c0_i32, %c0_i32_0 : i32, i32
  }
  func.func @transform_3(%arg0: i32) -> (i32, i32) {
    %c0_i32 = arith.constant 0 : i32
    %c0_i32_0 = arith.constant 0 : i32
    %c0_i32_1 = arith.constant 0 : i32
    return %c0_i32, %c0_i32_0 : i32, i32
  }
  func.func @transform_4(%arg0: i32) -> (i32, i32) {
    %c0_i32 = arith.constant 0 : i32
    %c0_i32_0 = arith.constant 0 : i32
    %c0_i32_1 = arith.constant 0 : i32
    return %c0_i32, %c0_i32_0 : i32, i32
  }
  func.func @transform_5(%arg0: i32) -> (i32, i32) {
    %c0_i32 = arith.constant 0 : i32
    %c0_i32_0 = arith.constant 0 : i32
    %c0_i32_1 = arith.constant 0 : i32
    return %c0_i32, %c0_i32_0 : i32, i32
  }
  func.func @transform_6(%arg0: i32) -> (i32, i32) {
    %c0_i32 = arith.constant 0 : i32
    %c0_i32_0 = arith.constant 0 : i32
    %c0_i32_1 = arith.constant 0 : i32
    return %c0_i32, %c0_i32_0 : i32, i32
  }
  func.func @transform_7(%arg0: i32) -> (i32, i32) {
    %c0_i32 = arith.constant 0 : i32
    %c0_i32_0 = arith.constant 0 : i32
    return %arg0, %c0_i32 : i32, i32
  }
}

</mosaic_0001>

<bundles_post_ra>
// kernel: tpu_custom_call.1
= control target key start
LH: loop header
LB: loop body
LE: loop exit
PB: predicated region body
PF: predicated region fallthrough
CT: control target
= control target key end

     0   :  { %s3002_s0 = inlined_call_operand.vmem [shape: f32[8,8,128], index: 0, kind: input, shape index: {}]   ;;  %s3003_s1 = inlined_call_operand.vmem [shape: f32[8,128,8], index: 1, kind: input, shape index: {}]   ;;  %s3004_s2 = inlined_call_operand.vmem [shape: f32[1,8], index: 2, kind: input, shape index: {}]   ;;  %s3005_s3 = inlined_call_operand.<no memory space> [shape: f32[1,1], index: 3, kind: input, shape index: {}]   ;;  %s3006_s4 = inlined_call_operand.vmem [shape: bf16[128,128], index: 4, kind: input, shape index: {}]   ;;  %s3007_s5 = inlined_call_operand.vmem [shape: bf16[8,128], index: 5, kind: input, shape index: {}]   ;;  %s3008_s6 = inlined_call_operand.vmem [shape: f32[1,128], index: 6, kind: input, shape index: {}]   ;;  %s3009_s7 = inlined_call_operand.hbm [shape: f32[1024,128], index: 7, kind: output, shape index: {}]  }
   0x1   :  { %12 = sst [smem:[#allocation2]] %s3005_s3 }
   0x2   :  { %13 = vsyncpa [#allocation5], 0 }
   0x3   :  { %14 = vsyncpa [#allocation4], 0 }
   0x4   :  { %16 = vsyncpa [#allocation4 + $0x1], 0  ;;  %s2149_s26 = smov 0   ;;  %s2151_s27 = smov 0  }
   0x5   :  { %s2153_s28 = smov 0   ;;  %s2155_s29 = smov 0  }
   0x6 LB: > { %s2170_s3 = sadd.s32 4294967295, %s2085_s29   ;;  %s1732_s30 = sadd.s32 4294967294, %s2085_s29   ;;  %s2085_s29 = sphi %s2155_s29, %s3052_s29   ;;  %s2081_s28 = sphi %s2153_s28, %s3051_s28   ;;  %s2077_s27 = sphi %s2151_s27, %s3050_s27   ;;  %s2073_s26 = sphi %s2149_s26, %s3049_s26  }
   0x7   : > { %s2174_s8 = sadd.s32 1, %s2085_s29   ;;  %s186_s9 = sadd.s32 1, %s2081_s28 }
   0x8   : > { %s183_s10 = ssub.s32 %s2085_s29, %s2174_s8  ;;  %p196_p0 = scmp.ne.s32.totalorder %s2081_s28, %s2077_s27 }
   0x9   : > { %p184_p1 = scmp.eq.s32.totalorder %s183_s10, 0  ;;  %p197_p2 = scmp.eq.s32.totalorder %s2170_s3, 1 }
   0xa   : > { %p202_p3 = scmp.ne.s32.totalorder %s2077_s27, %s2073_s26  ;;  %p203_p4 = scmp.eq.s32.totalorder %s1732_s30, 1 }
   0xb   : > { %s2185_s11 = scalar_select %p184_p1, %s2081_s28, %s186_s9  }
   0xc   : > { %p2187_p5 = por %p197_p2, %p196_p0  ;;  %p2191_p6 = por %p203_p4, %p202_p3 }
   0xd   : > { %p1733_p7 = scmp.ge.s32.totalorder %s2085_s29, 1  ;;  %p210_p8 = scmp.lt.s32.totalorder %s2085_s29, 3 }
   0xe   : > { %p1949_p9 = scmp.eq.s32.totalorder %s2170_s3, 0  ;;  %s222_s16 = sshll.u32 %s3004_s2, 4  ;;  %s223_s16 = int_to_ptr.vmem [resolvable:$true] %s222_s16 }
   0xf   : > { %p211_p10 = pnand %p1733_p7, %p210_p8  ;;  %s2087_s17 = smov [#allocation3]  }
  0x11   : > { %p1941_p11 = pneg %p211_p10  ;;  %266 = sbr.rel (%p211_p10) target bundleno = 570 (0x23a), region = 48 }
  0x13   : > { %p1942_p12 = pnand %p1949_p9, %p1941_p11 }
  0x15   : > { %1944 = dma.vmem_to_smem (!%p1942_p12), %s223_s16, 16, %s2087_s17, [#allocation5]  }
  0x16   : > { %2064 = dma.done.wait (%p1949_p9), [#allocation5], 16  }
  0x17   : > { %2066 = vsyncadd (%p1949_p9), [#allocation5], 4294967280 }
  0x18   : > { %273 = sfence }
  0x19   : > { %v946_v0 = vld [vmem:[%s3007_s5] sm:$0xf]  ;;  %vm1044_vm0 = vcmask 1043456   ;;  %s1739_s20 = sshll.u32 %s2170_s3, 2  ;;  %s325_s21 = sld [smem:[#allocation3]]  ;;  %vm947_vm1 = vcmask 64512  }
  0x1a   : > { %v1046_v1 = vsel %vm1044_vm0, %v946_v0, 0  ;;  %p307_p13 = scmp.lt.s32.totalorder %s1739_s20, 7  ;;  %s1744_s22 = sld [smem:[#allocation3 + $0x1]] }
  0x1b   : > { %1055 = vmatpush.bf16.msra.mxu0 %v1046_v1  ;;  %1926 = vmatpush.bf16.msra.mxu3 %v1046_v1  ;;  %s1745_s23 = sld [smem:[#allocation3 + $0x2]]  ;;  %s2091_s30 = smov 281  }
  0x1c   : > { %s3054_s20 = smov (!%p307_p13, %s1739_s20), 7  ;;  %s1746_s17 = sld [smem:[#allocation3 + $0x3]] }
  0x1d   : > { %s1916_s24 = sshll.u32 %s3054_s20, 7  ;;  %s1740_s25 = sshll.u32 %s3054_s20, 3 }
  0x1e   : > { %s2208_s10 = scalar_lea.vmem %s3003_s1, %s1916_s24  ;;  %s2213_s16 = scalar_lea.vmem %s3002_s0, %s1740_s25 }
  0x1f   : > { %v834_v2 = vld [vmem:[%s2208_s10] sm:$0xff]  ;;  %v835_v3 = vld [vmem:[%s2208_s10 + $0x8] sm:$0xff]  ;;  %v2217_v4 = vstv %s325_s21  ;;  %v323_v6 = vld [vmem:[%s2213_s16 + $0x10] sm:$0x1]  ;;  %s1747_s18 = sld [smem:[#allocation3 + $0x4]]  ;;  %s2089_s24 = smov 273  }
  0x20   : > { %v898_v5 = vpack.c.bf16 %v835_v3, %v834_v2  ;;  %v337_v7 = vld [vmem:[%s2213_s16 + $0x11] sm:$0x1]  ;;  %v2221_v8 = vstv %s1744_s22  ;;  %v329_v9 = vmul.f32 %v2217_v4, %v323_v6  ;;  %v351_v11 = vld [vmem:[%s2213_s16 + $0x12] sm:$0x1]  ;;  %v365_v15 = vld [vmem:[%s2213_s16 + $0x13] sm:$0x1] }
  0x21   : > { %v343_v10 = vmul.f32 %v2221_v8, %v337_v7  ;;  %v2227_v12 = vstv %s1745_s23  ;;  %s1748_s19 = sld [smem:[#allocation3 + $0x5]]  ;;  %v321_v16 = vld [vmem:[%s2213_s16] sm:$0x1]  ;;  %v335_v18 = vld [vmem:[%s2213_s16 + $0x1] sm:$0x1]  ;;  %v836_v44 = vld [vmem:[%s2208_s10 + $0x10] sm:$0xff] }
  0x22   : > { %1751 = vmatmul.msk.bf16.vlgmr.msra.gmra.mxu0 %vm947_vm1, %v898_v5  ;;  %v357_v14 = vmul.f32 %v2227_v12, %v351_v11  ;;  %s1749_s20 = sld [smem:[#allocation3 + $0x6]]  ;;  %v327_v17 = vmul.f32 %v2217_v4, %v321_v16  ;;  %v349_v19 = vld [vmem:[%s2213_s16 + $0x2] sm:$0x1]  ;;  %v2235_v21 = vstv %s1746_s17  ;;  %v341_v22 = vmul.f32 %v2221_v8, %v335_v18  ;;  %v363_v24 = vld [vmem:[%s2213_s16 + $0x3] sm:$0x1]  ;;  %v837_v45 = vld [vmem:[%s2208_s10 + $0x18] sm:$0xff] }
  0x23   : > { %v347_v13 = vadd.f32 %v343_v10, %v329_v9  ;;  %s1750_s21 = sld [smem:[#allocation3 + $0x7]]  ;;  %v355_v23 = vmul.f32 %v2227_v12, %v349_v19  ;;  %v371_v25 = vmul.f32 %v2235_v21, %v365_v15  ;;  %v379_v26 = vld [vmem:[%s2213_s16 + $0x14] sm:$0x1]  ;;  %v377_v27 = vld [vmem:[%s2213_s16 + $0x4] sm:$0x1]  ;;  %v369_v30 = vmul.f32 %v2235_v21, %v363_v24  ;;  %s2088_s23 = smov 257  }
  0x24   : > { %v393_v28 = vld [vmem:[%s2213_s16 + $0x15] sm:$0x1]  ;;  %v345_v29 = vadd.f32 %v341_v22, %v327_v17  ;;  %v391_v31 = vld [vmem:[%s2213_s16 + $0x5] sm:$0x1]  ;;  %v407_v34 = vld [vmem:[%s2213_s16 + $0x16] sm:$0x1]  ;;  %v899_v55 = vpack.c.bf16 %v837_v45, %v836_v44 }
  0x25   : > { %v361_v20 = vadd.f32 %v357_v14, %v347_v13  ;;  %v2246_v33 = vstv %s1747_s18  ;;  %s433_s22 = sld [smem:[#allocation2]]  ;;  %v421_v41 = vld [vmem:[%s2213_s16 + $0x17] sm:$0x1]  ;;  %v405_v43 = vld [vmem:[%s2213_s16 + $0x6] sm:$0x1]  ;;  %v839_v7 = vld [vmem:[%s2208_s10 + $0x28] sm:$0xff] }
  0x26   : > { %v385_v35 = vmul.f32 %v2246_v33, %v379_v26  ;;  %v359_v37 = vadd.f32 %v355_v23, %v345_v29  ;;  %v383_v38 = vmul.f32 %v2246_v33, %v377_v27  ;;  %v419_v50 = vld [vmem:[%s2213_s16 + $0x7] sm:$0x1]  ;;  %s2090_s25 = smov 265   ;;  %s2092_s9 = smov 289   ;;  %v840_v10 = vld [vmem:[%s2208_s10 + $0x30] sm:$0xff]  ;;  %v841_v11 = vld [vmem:[%s2208_s10 + $0x38] sm:$0xff] }
  0x27   : > { %v375_v32 = vadd.f32 %v371_v25, %v361_v20  ;;  %v2250_v36 = vstv %s1748_s19  ;;  %v838_v6 = vld [vmem:[%s2208_s10 + $0x20] sm:$0xff]  ;;  %v901_v13 = vpack.c.bf16 %v841_v11, %v840_v10  ;;  %s3018_s14 = smov 297   ;;  %s3014_s15 = smov 305   ;;  %v843_v15 = vld [vmem:[%s2208_s10 + $0x48] sm:$0xff]  ;;  %v844_v17 = vld [vmem:[%s2208_s10 + $0x50] sm:$0xff] }
  0x28   : > { %v399_v39 = vmul.f32 %v2250_v36, %v393_v28  ;;  %v2254_v40 = vstv %s1749_s20  ;;  %v397_v42 = vmul.f32 %v2250_v36, %v391_v31  ;;  %v373_v49 = vadd.f32 %v369_v30, %v359_v37  ;;  %v842_v14 = vld [vmem:[%s2208_s10 + $0x40] sm:$0xff]  ;;  %s3016_s17 = smov 313   ;;  %s3012_s18 = smov 329   ;;  %v845_v18 = vld [vmem:[%s2208_s10 + $0x58] sm:$0xff]  ;;  %v1923_v22 = vld [vmem:[%s3006_s4 + $0x30] sm:$0xff] }
  0x29   : > { %v389_v46 = vadd.f32 %v385_v35, %v375_v32  ;;  %v413_v47 = vmul.f32 %v2254_v40, %v407_v34  ;;  %v2262_v48 = vstv %s1750_s21  ;;  %v411_v54 = vmul.f32 %v2254_v40, %v405_v43  ;;  %s3010_s19 = smov 321   ;;  %s2098_s20 = smov 337   ;;  %v1924_v20 = vld [vmem:[%s3006_s4 + $0x38] sm:$0xff]  ;;  %v1922_v23 = vld [vmem:[%s3006_s4 + $0x28] sm:$0xff]  ;;  %v846_v24 = vld [vmem:[%s2208_s10 + $0x60] sm:$0xff] }
  0x2a   : > { %v427_v52 = vmul.f32 %v2262_v48, %v421_v41  ;;  %v387_v53 = vadd.f32 %v383_v38, %v373_v49  ;;  %v425_v58 = vmul.f32 %v2262_v48, %v419_v50  ;;  %v900_v9 = vpack.c.bf16 %v839_v7, %v838_v6  ;;  %s3020_s21 = smov 345   ;;  %1265 = vmatpush.bf16.msra.mxu1 %v1924_v20  ;;  %v847_v25 = vld [vmem:[%s2208_s10 + $0x68] sm:$0xff]  ;;  %v1921_v27 = vld [vmem:[%s3006_s4 + $0x20] sm:$0xff]  ;;  %v1920_v28 = vld [vmem:[%s3006_s4 + $0x18] sm:$0xff] }
  0x2b   : > { %v403_v51 = vadd.f32 %v399_v39, %v389_v46  ;;  %v2268_v59 = vstv %s433_s22  ;;  %v902_v16 = vpack.c.bf16 %v843_v15, %v842_v14  ;;  %v903_v19 = vpack.c.bf16 %v845_v18, %v844_v17  ;;  %1927 = vmatpush.bf16.msra.mxu2 %v1924_v20  ;;  %s2102_s22 = smov 369   ;;  %v1919_v29 = vld [vmem:[%s3006_s4 + $0x10] sm:$0xff]  ;;  %v324_v30 = vld [vmem:[%s2213_s16 + $0x18] sm:$0x1]  ;;  %v338_v31 = vld [vmem:[%s2213_s16 + $0x19] sm:$0x1] }
  0x2c   : > { %v401_v57 = vadd.f32 %v397_v42, %v387_v53  ;;  %v904_v26 = vpack.c.bf16 %v847_v25, %v846_v24  ;;  %v848_v32 = vld [vmem:[%s2208_s10 + $0x70] sm:$0xff]  ;;  %v849_v34 = vld [vmem:[%s2208_s10 + $0x78] sm:$0xff]  ;;  %v330_v35 = vmul.f32 %v2217_v4, %v324_v30  ;;  %v344_v37 = vmul.f32 %v2221_v8, %v338_v31  ;;  %v322_v39 = vld [vmem:[%s2213_s16 + $0x8] sm:$0x1] }
  0x2d   : > { %v417_v56 = vadd.f32 %v413_v47, %v403_v51  ;;  %v352_v38 = vld [vmem:[%s2213_s16 + $0x1a] sm:$0x1]  ;;  %v336_v41 = vld [vmem:[%s2213_s16 + $0x9] sm:$0x1]  ;;  %v328_v45 = vmul.f32 %v2217_v4, %v322_v39  ;;  %v905_v47 = vpack.c.bf16 %v849_v34, %v848_v32  ;;  %v366_v49 = vld [vmem:[%s2213_s16 + $0x1b] sm:$0x1]  ;;  %v703_v31 = vlaneseq }
  0x2e   : > { %v415_v61 = vadd.f32 %v411_v54, %v401_v57  ;;  %1266 = vmatpush.bf16.msra.mxu1 %v1923_v22  ;;  %v1918_v42 = vld [vmem:[%s3006_s4 + $0x8] sm:$0xff]  ;;  %v348_v43 = vadd.f32 %v344_v37, %v330_v35  ;;  %v358_v44 = vmul.f32 %v2227_v12, %v352_v38  ;;  %v342_v46 = vmul.f32 %v2221_v8, %v336_v41  ;;  %v1917_v51 = vld [vmem:[%s3006_s4] sm:$0xff]  ;;  %v422_v6 = vld [vmem:[%s2213_s16 + $0x1f] sm:$0x1] }
  0x2f   : > { %v431_v60 = vadd.f32 %v427_v52, %v417_v56  ;;  %1928 = vmatpush.bf16.msra.mxu2 %v1923_v22  ;;  %v350_v50 = vld [vmem:[%s2213_s16 + $0xa] sm:$0x1]  ;;  %v372_v53 = vmul.f32 %v2235_v21, %v366_v49  ;;  %v364_v8 = vld [vmem:[%s2213_s16 + $0xb] sm:$0x1]  ;;  %v406_v10 = vld [vmem:[%s2213_s16 + $0xe] sm:$0x1] }
  0x30   : > { %v429_v63 = vadd.f32 %v425_v58, %v415_v61  ;;  %v362_v52 = vadd.f32 %v358_v44, %v348_v43  ;;  %v346_v54 = vadd.f32 %v342_v46, %v328_v45  ;;  %v356_v4 = vmul.f32 %v2227_v12, %v350_v50  ;;  %v869_v15 = vld [vmem:[%s2208_s10 + $0x118] sm:$0xff]  ;;  %v420_v17 = vld [vmem:[%s2213_s16 + $0xf] sm:$0x1]  ;;  %v870_v34 = vld [vmem:[%s2208_s10 + $0x120] sm:$0xff] }
  0x31   : > { %v437_v62 = vadd.f32 %v2268_v59, %v431_v60  ;;  %v370_v58 = vmul.f32 %v2235_v21, %v364_v8  ;;  %v394_v60 = vld [vmem:[%s2213_s16 + $0x1d] sm:$0x1]  ;;  %v412_v14 = vmul.f32 %v2254_v40, %v406_v10  ;;  %v426_v20 = vmul.f32 %v2262_v48, %v420_v17  ;;  %v851_v24 = vld [vmem:[%s2208_s10 + $0x88] sm:$0xff]  ;;  %v852_v39 = vld [vmem:[%s2208_s10 + $0x90] sm:$0xff] }
  0x32   : > { %1752 = vmatmul.msk.bf16.gmra.mxu0 %vm947_vm1, %v899_v55  ;;  %v435_v1 = vadd.f32 %v2268_v59, %v429_v63  ;;  %1267 = vmatpush.bf16.msra.mxu1 %v1922_v23  ;;  %v380_v55 = vld [vmem:[%s2213_s16 + $0x1c] sm:$0x1]  ;;  %v376_v56 = vadd.f32 %v372_v53, %v362_v52  ;;  %v360_v61 = vadd.f32 %v356_v4, %v346_v54  ;;  %v2437_v32 = vshrl.u32 %v703_v31, 7  ;;  %v871_v35 = vld [vmem:[%s2208_s10 + $0x128] sm:$0xff]  ;;  %v856_v10 = vld [vmem:[%s2208_s10 + $0xb0] sm:$0xff] }
  0x33   : > { %v441_v0 = vmax.f32 %v437_v62, 0.0  ;;  %1929 = vmatpush.bf16.msra.mxu2 %v1922_v23  ;;  %v386_v57 = vmul.f32 %v2246_v33, %v380_v55  ;;  %v378_v62 = vld [vmem:[%s2213_s16 + $0xc] sm:$0x1]  ;;  %v400_v12 = vmul.f32 %v2250_v36, %v394_v60  ;;  %v850_v23 = vld [vmem:[%s2208_s10 + $0x80] sm:$0xff]  ;;  %v916_v37 = vpack.c.bf16 %v871_v35, %v870_v34  ;;  %v853_v41 = vld [vmem:[%s2208_s10 + $0x98] sm:$0xff] }
  0x34   : > { %v439_v3 = vmax.f32 %v435_v1, 0.0  ;;  %v408_v1 = vld [vmem:[%s2213_s16 + $0x1e] sm:$0x1]  ;;  %v2449_v43 = vand.u32 127, %v703_v31  ;;  %v907_v45 = vpack.c.bf16 %v853_v41, %v852_v39  ;;  %v872_v55 = vld [vmem:[%s2208_s10 + $0x130] sm:$0xff]  ;;  %v707_v60 = vadd.s32 24, %v2437_v32 }
  0x35   : > { %v2273_v2 = vperm.slane %v441_v0, 0  ;;  %v390_v63 = vadd.f32 %v386_v57, %v376_v56  ;;  %v384_v0 = vmul.f32 %v2246_v33, %v378_v62  ;;  %v414_v21 = vmul.f32 %v2254_v40, %v408_v1  ;;  %v868_v33 = vld [vmem:[%s2208_s10 + $0x110] sm:$0xff]  ;;  %v873_v4 = vld [vmem:[%s2208_s10 + $0x138] sm:$0xff]  ;;  %v854_v56 = vld [vmem:[%s2208_s10 + $0xa0] sm:$0xff] }
  0x36   : > { %v2277_v5 = vperm.slane %v439_v3, 0  ;;  %1268 = vmatpush.bf16.msra.mxu1 %v1921_v27  ;;  %v915_v18 = vpack.c.bf16 %v869_v15, %v868_v33  ;;  %v906_v40 = vpack.c.bf16 %v851_v24, %v850_v23  ;;  %vm722_vm2 = vcmp.ge.s32.totalorder %v2437_v32, %v2449_v43  ;;  %v855_v57 = vld [vmem:[%s2208_s10 + $0xa8] sm:$0xff] }
  0x37   : > { %577 = vrot.lane.b32.xlu0 %v2273_v2, %s2088_s23  ;;  %585 = vrot.lane.b32.xlu2 %v2273_v2, %s2089_s24  ;;  %v404_v3 = vadd.f32 %v400_v12, %v390_v63  ;;  %v917_v8 = vpack.c.bf16 %v873_v4, %v872_v55  ;;  %vm725_vm6 = vcmp.ge.s32.totalorder %v707_v60, %v2449_v43  ;;  %v711_v31 = vadd.s32 56, %v2437_v32  ;;  %v861_v55 = vld [vmem:[%s2208_s10 + $0xd8] sm:$0xff] }
  0x38   : > { %449 = vrot.lane.b32.xlu1 %v2277_v5, %s2088_s23  ;;  %1930 = vmatpush.bf16.msra.mxu2 %v1921_v27  ;;  %v712_v4 = vadd.s32 64, %v2437_v32 }
  0x39   : > { %v418_v11 = vadd.f32 %v414_v21, %v404_v3  ;;  %1768 = vmatmul.msk.bf16.vlgmr.msra.gmra.mxu3 %vm947_vm1, %v915_v18  ;;  %vm729_vm12 = vcmp.ge.s32.totalorder %v711_v31, %v2449_v43  ;;  %v717_v31 = vadd.s32 104, %v2437_v32 }
  0x3a   : > { %1269 = vmatpush.bf16.msra.mxu1 %v1920_v28  ;;  %vm730_vm14 = vcmp.ge.s32.totalorder %v712_v4, %v2449_v43  ;;  %v718_v4 = vadd.s32 112, %v2437_v32 }
  0x3c   : > { %1931 = vmatpush.bf16.msra.mxu2 %v1920_v28 }
  0x3e   : > { %1270 = vmatpush.bf16.msra.mxu1 %v1919_v29 }
  0x3f   : > { %581 = vrot.lane.b32.xlu0 %v2273_v2, %s2090_s25  ;;  %589 = vrot.lane.b32.xlu2 %v2273_v2, %s2091_s30 }
  0x40   : > { %453 = vrot.lane.b32.xlu1 %v2277_v5, %s2090_s25  ;;  %1932 = vmatpush.bf16.msra.mxu2 %v1919_v29 }
  0x42   : > { %1753 = vmatmul.msk.bf16.gmra.mxu0 %vm947_vm1, %v900_v9  ;;  %1271 = vmatpush.bf16.msra.mxu1 %v1918_v42 }
  0x44   : > { %1933 = vmatpush.bf16.msra.mxu2 %v1918_v42  ;;  %v705_v42 = vadd.s32 8, %v2437_v32 }
  0x46   : > { %1272 = vmatpush.bf16.msra.mxu1 %v1917_v51  ;;  %vm723_vm3 = vcmp.ge.s32.totalorder %v705_v42, %v2449_v43 }
  0x47   : > { %457 = vrot.lane.b32.xlu0 %v2277_v5, %s2089_s24  ;;  %593 = vrot.lane.b32.xlu2 %v2273_v2, %s2092_s9  ;;  %vm2463_vm4 = vmpackc.low %vm723_vm3, %vm722_vm2 }
  0x48   : > { %461 = vrot.lane.b32.xlu1 %v2277_v5, %s2091_s30  ;;  %1934 = vmatpush.bf16.msra.mxu2 %v1917_v51 }
  0x49   : > { %1769 = vmatmul.msk.bf16.gmra.mxu3 %vm947_vm1, %v916_v37 }
  0x4f   : > { %597 = vrot.lane.b32.xlu0 %v2273_v2, %s3018_s14  ;;  %469 = vrot.lane.b32.xlu2 %v2277_v5, %s3018_s14 }
  0x50   : > { %465 = vrot.lane.b32.xlu1 %v2277_v5, %s2092_s9 }
  0x52   : > { %1754 = vmatmul.msk.bf16.gmra.mxu0 %vm947_vm1, %v901_v13  ;;  %v428_v13 = vmul.f32 %v2262_v48, %v422_v6  ;;  %v874_v6 = vld [vmem:[%s2208_s10 + $0x140] sm:$0xff] }
  0x57   : > { %601 = vrot.lane.b32.xlu0 %v2273_v2, %s3014_s15  ;;  %473 = vrot.lane.b32.xlu2 %v2277_v5, %s3014_s15  ;;  %s2103_s15 = smov 377  }
  0x58   : > { %605 = vrot.lane.b32.xlu1 %v2273_v2, %s3016_s17 }
  0x59   : > { %1770 = vmatmul.msk.bf16.gmra.mxu3 %vm947_vm1, %v917_v8  ;;  %v713_v8 = vadd.s32 72, %v2437_v32 }
  0x5b   : > { %vm731_vm15 = vcmp.ge.s32.totalorder %v713_v8, %v2449_v43  ;;  %v719_v8 = vadd.s32 120, %v2437_v32 }
  0x5c   : > { %vm2599_vm0 = vmpackc.low %vm731_vm15, %vm730_vm14 }
  0x5f   : > { %477 = vrot.lane.b32.xlu0 %v2277_v5, %s3016_s17  ;;  %613 = vrot.lane.b32.xlu2 %v2273_v2, %s3012_s18 }
  0x60   : > { %609 = vrot.lane.b32.xlu1 %v2273_v2, %s3010_s19 }
  0x62   : > { %1755 = vmatmul.msk.bf16.gmra.mxu0 %vm947_vm1, %v902_v16 }
  0x67   : > { %481 = vrot.lane.b32.xlu0 %v2277_v5, %s3010_s19  ;;  %617 = vrot.lane.b32.xlu2 %v2273_v2, %s2098_s20  ;;  %s2101_s19 = smov 361  }
  0x68   : > { %485 = vrot.lane.b32.xlu1 %v2277_v5, %s3012_s18 }
  0x6f   : > { %621 = vrot.lane.b32.xlu0 %v2273_v2, %s3020_s21  ;;  %493 = vrot.lane.b32.xlu2 %v2277_v5, %s3020_s21  ;;  %s3022_s21 = smov 353  }
  0x70   : > { %489 = vrot.lane.b32.xlu1 %v2277_v5, %s2098_s20 }
  0x72   : > { %1756 = vmatmul.msk.bf16.gmra.mxu0 %vm947_vm1, %v903_v19  ;;  %v432_v19 = vadd.f32 %v428_v13, %v418_v11  ;;  %v857_v11 = vld [vmem:[%s2208_s10 + $0xb8] sm:$0xff]  ;;  %v708_v13 = vadd.s32 32, %v2437_v32 }
  0x73   : > { %v909_v33 = vpack.c.bf16 %v857_v11, %v856_v10  ;;  %v715_v10 = vadd.s32 88, %v2437_v32 }
  0x74   : > { %vm726_vm8 = vcmp.ge.s32.totalorder %v708_v13, %v2449_v43 }
  0x75   : > { %vm733_vm3 = vcmp.ge.s32.totalorder %v715_v10, %v2449_v43  ;;  %v886_v10 = vld [vmem:[%s2208_s10 + $0x1a0] sm:$0xff] }
  0x77   : > { %625 = vrot.lane.b32.xlu0 %v2273_v2, %s3022_s21  ;;  %497 = vrot.lane.b32.xlu2 %v2277_v5, %s3022_s21 }
  0x78   : > { %629 = vrot.lane.b32.xlu1 %v2273_v2, %s2101_s19 }
  0x7f   : > { %501 = vrot.lane.b32.xlu0 %v2277_v5, %s2101_s19  ;;  %637 = vrot.lane.b32.xlu2 %v2273_v2, %s2103_s15 }
  0x80   : > { %633 = vrot.lane.b32.xlu1 %v2273_v2, %s2102_s22  ;;  %v374_v2 = vadd.f32 %v370_v58, %v360_v61  ;;  %v706_v58 = vadd.s32 16, %v2437_v32  ;;  %v908_v61 = vpack.c.bf16 %v855_v57, %v854_v56 }
  0x82   : > { %1757 = vmatmul.msk.bf16.gmra.mxu0 %vm947_vm1, %v904_v26  ;;  %v388_v7 = vadd.f32 %v384_v0, %v374_v2  ;;  %vm724_vm5 = vcmp.ge.s32.totalorder %v706_v58, %v2449_v43 }
  0x83   : > { %vm2497_vm7 = vmpackc.low %vm725_vm6, %vm724_vm5 }
  0x87   : > { %505 = vrot.lane.b32.xlu0 %v2277_v5, %s2102_s22 }
  0x88   : > { %509 = vrot.lane.b32.xlu1 %v2277_v5, %s2103_s15  ;;  %v392_v5 = vld [vmem:[%s2213_s16 + $0xd] sm:$0x1]  ;;  %s3028_s16 = smov 297  }
  0x89   : > { %v398_v9 = vmul.f32 %v2250_v36, %v392_v5  ;;  %v438_v36 = vadd.f32 %v2268_v59, %v432_v19 }
  0x8b   : > { %v402_v16 = vadd.f32 %v398_v9, %v388_v7  ;;  %v442_v26 = vmax.f32 %v438_v36, 0.0  ;;  %v875_v7 = vld [vmem:[%s2208_s10 + $0x148] sm:$0xff]  ;;  %v876_v36 = vld [vmem:[%s2208_s10 + $0x150] sm:$0xff] }
  0x8c   : > { %v918_v9 = vpack.c.bf16 %v875_v7, %v874_v6  ;;  %v862_v6 = vld [vmem:[%s2208_s10 + $0xe0] sm:$0xff]  ;;  %v863_v7 = vld [vmem:[%s2208_s10 + $0xe8] sm:$0xff] }
  0x8d   : > { %v416_v22 = vadd.f32 %v412_v14, %v402_v16  ;;  %v2424_v29 = vperm.slane %v442_v26, 0  ;;  %v709_v14 = vadd.s32 40, %v2437_v32  ;;  %v912_v11 = vpack.c.bf16 %v863_v7, %v862_v6 }
  0x8e   : > { %1771 = vmatmul.msk.bf16.gmra.mxu3 %vm947_vm1, %v918_v9  ;;  %v714_v9 = vadd.s32 80, %v2437_v32 }
  0x8f   : > { %v430_v25 = vadd.f32 %v426_v20, %v416_v22  ;;  %645 = vrot.lane.b32.xlu0 %v2424_v29, %s2090_s25  ;;  %641 = vrot.lane.b32.xlu2 %v2424_v29, %s2088_s23  ;;  %vm727_vm9 = vcmp.ge.s32.totalorder %v709_v14, %v2449_v43 }
  0x90   : > { %vm2531_vm10 = vmpackc.low %vm727_vm9, %vm726_vm8  ;;  %vm732_vm2 = vcmp.ge.s32.totalorder %v714_v9, %v2449_v43  ;;  %vm735_vm8 = vcmp.ge.s32.totalorder %v717_v31, %v2449_v43 }
  0x91   : > { %v436_v27 = vadd.f32 %v2268_v59, %v430_v25  ;;  %v586_v51 = vpop.permute.xlu2 %585  ;;  %v877_v25 = vld [vmem:[%s2208_s10 + $0x158] sm:$0xff]  ;;  %vm2621_vm5 = vmpackc.low %vm733_vm3, %vm732_vm2 }
  0x92   : > { %1758 = vmatmul.msk.bf16.gmra.mxu0 %vm947_vm1, %v905_v47  ;;  %v919_v26 = vpack.c.bf16 %v877_v25, %v876_v36  ;;  %v882_v36 = vld [vmem:[%s2208_s10 + $0x180] sm:$0xff]  ;;  %v883_v25 = vld [vmem:[%s2208_s10 + $0x188] sm:$0xff] }
  0x93   : > { %v440_v48 = vmax.f32 %v436_v27, 0.0  ;;  %v859_v27 = vld [vmem:[%s2208_s10 + $0xc8] sm:$0xff] }
  0x95   : > { %v2431_v30 = vperm.slane %v440_v48, 0  ;;  %v710_v48 = vadd.s32 48, %v2437_v32 }
  0x97   : > { %513 = vrot.lane.b32.xlu1 %v2431_v30, %s2088_s23  ;;  %649 = vrot.lane.b32.xlu0 %v2424_v29, %s2089_s24  ;;  %s3029_s23 = smov 313   ;;  %vm728_vm11 = vcmp.ge.s32.totalorder %v710_v48, %v2449_v43  ;;  %v716_v48 = vadd.s32 96, %v2437_v32 }
  0x98   : > { %517 = vrot.lane.b32.xlu2 %v2431_v30, %s2090_s25  ;;  %s3033_s25 = smov 321   ;;  %vm2565_vm13 = vmpackc.low %vm729_vm12, %vm728_vm11  ;;  %vm736_vm11 = vcmp.ge.s32.totalorder %v718_v4, %v2449_v43  ;;  %vm737_vm12 = vcmp.ge.s32.totalorder %v719_v8, %v2449_v43 }
  0x99   : > { %v590_v62 = vpop.permute.xlu2 %589  ;;  %vm734_vm6 = vcmp.ge.s32.totalorder %v716_v48, %v2449_v43  ;;  %vm2665_vm14 = vmpackc.low %vm737_vm12, %vm736_vm11 }
  0x9a   : > { %v1867_v2 = vpack.c.bf16 %v590_v62, %v586_v51  ;;  %v879_v51 = vld [vmem:[%s2208_s10 + $0x168] sm:$0xff]  ;;  %vm2643_vm9 = vmpackc.low %vm735_vm8, %vm734_vm6 }
  0x9e   : > { %1772 = vmatmul.msk.bf16.gmra.mxu3 %vm947_vm1, %v919_v26  ;;  %v922_v26 = vpack.c.bf16 %v883_v25, %v882_v36  ;;  %v2688_v25 = vld [vmem:[%s3008_s6] ss:$0 sm:$0xff] }
  0x9f   : > { %v2422_v28 = vpop.f32.mrf.mxu0  ;;  %653 = vrot.lane.b32.xlu1 %v2424_v29, %s2091_s30  ;;  %525 = vrot.lane.b32.xlu0 %v2431_v30, %s2091_s30  ;;  %s3034_s30 = smov 329  }
  0xa0   : > { %521 = vrot.lane.b32.xlu2 %v2431_v30, %s2089_s24  ;;  %s3030_s24 = smov 305  }
  0xa1   : > { %v594_v5 = vpop.permute.xlu2 %593 }
  0xa2   : > { %1759 = vmatmul.msk.bf16.gmra.mxu0 %vm947_vm1, %v906_v40  ;;  %v858_v40 = vld [vmem:[%s2208_s10 + $0xc0] sm:$0xff] }
  0xa3   : > { %v910_v34 = vpack.c.bf16 %v859_v27, %v858_v40  ;;  %v864_v40 = vld [vmem:[%s2208_s10 + $0xf0] sm:$0xff]  ;;  %v865_v27 = vld [vmem:[%s2208_s10 + $0xf8] sm:$0xff] }
  0xa7   : > { %v2435_v59 = vpop.f32.mrf.mxu0  ;;  %657 = vrot.lane.b32.xlu1 %v2424_v29, %s2092_s9  ;;  %529 = vrot.lane.b32.xlu0 %v2431_v30, %s2092_s9  ;;  %s3037_s9 = smov 345  }
  0xa8   : > { %661 = vrot.lane.b32.xlu2 %v2424_v29, %s3028_s16 }
  0xa9   : > { %v578_v38 = vpop.permute.xlu0 %577  ;;  %v470_v17 = vpop.permute.xlu2 %469 }
  0xaa   : > { %v450_v44 = vpop.permute.xlu1 %449 }
  0xaf   : > { %v2453_v46 = vpop.f32.mrf.mxu0  ;;  %533 = vrot.lane.b32.xlu1 %v2431_v30, %s3028_s16  ;;  %669 = vrot.lane.b32.xlu0 %v2424_v29, %s3029_s23 }
  0xb0   : > { %665 = vrot.lane.b32.xlu2 %v2424_v29, %s3030_s24 }
  0xb1   : > { %v582_v47 = vpop.permute.xlu0 %581 }
  0xb2   : > { %1760 = vmatmul.msk.bf16.gmra.mxu0 %vm947_vm1, %v907_v45  ;;  %v1864_v50 = vpack.c.bf16 %v582_v47, %v578_v38  ;;  %v454_v52 = vpop.permute.xlu1 %453  ;;  %v474_v38 = vpop.permute.xlu2 %473 }
  0xb3   : > { %v1816_v53 = vpack.c.bf16 %v454_v52, %v450_v44 }
  0xb4   : > { %1865 = vmatmul.msk.bf16.vlgmr.msra.gmra.mxu2 %vm2463_vm4, %v1864_v50  ;;  %v878_v50 = vld [vmem:[%s2208_s10 + $0x160] sm:$0xff] }
  0xb5   : > { %1817 = vmatmul.msk.bf16.vlgmr.msra.gmra.mxu1 %vm2463_vm4, %v1816_v53  ;;  %v920_v52 = vpack.c.bf16 %v879_v51, %v878_v50  ;;  %v860_v53 = vld [vmem:[%s2208_s10 + $0xd0] sm:$0xff] }
  0xb6   : > { %v911_v56 = vpack.c.bf16 %v861_v55, %v860_v53  ;;  %v866_v53 = vld [vmem:[%s2208_s10 + $0x100] sm:$0xff]  ;;  %v867_v55 = vld [vmem:[%s2208_s10 + $0x108] sm:$0xff] }
  0xb7   : > { %v2471_v54 = vpop.f32.mrf.mxu0  ;;  %537 = vrot.lane.b32.xlu1 %v2431_v30, %s3030_s24  ;;  %673 = vrot.lane.b32.xlu0 %v2424_v29, %s3033_s25 }
  0xb8   : > { %541 = vrot.lane.b32.xlu2 %v2431_v30, %s3029_s23  ;;  %1773 = vmatmul.msk.bf16.gmra.mxu3 %vm947_vm1, %v920_v52 }
  0xb9   : > { %v458_v12 = vpop.permute.xlu0 %457 }
  0xba   : > { %v462_v0 = vpop.permute.xlu1 %461  ;;  %v614_v57 = vpop.permute.xlu2 %613 }
  0xbb   : > { %v1819_v3 = vpack.c.bf16 %v462_v0, %v458_v12 }
  0xbf   : > { %v2488_v63 = vpop.f32.mrf.mxu0  ;;  %677 = vrot.lane.b32.xlu1 %v2424_v29, %s3034_s30  ;;  %549 = vrot.lane.b32.xlu0 %v2431_v30, %s3034_s30 }
  0xc0   : > { %545 = vrot.lane.b32.xlu2 %v2431_v30, %s3033_s25 }
  0xc1   : > { %v598_v15 = vpop.permute.xlu0 %597 }
  0xc2   : > { %1761 = vmatmul.msk.bf16.gmra.mxu0 %vm947_vm1, %v908_v61  ;;  %v466_v18 = vpop.permute.xlu1 %465  ;;  %v1870_v20 = vpack.c.bf16 %v598_v15, %v594_v5  ;;  %v881_v5 = vld [vmem:[%s2208_s10 + $0x178] sm:$0xff] }
  0xc3   : > { %v1822_v22 = vpack.c.bf16 %v470_v17, %v466_v18 }
  0xc4   : > { %1868 = vmatmul.msk.bf16.gmra.mxu2 %vm2497_vm7, %v1867_v2  ;;  %v618_v2 = vpop.permute.xlu2 %617 }
  0xc5   : > { %1820 = vmatmul.msk.bf16.gmra.mxu1 %vm2497_vm7, %v1819_v3  ;;  %v880_v3 = vld [vmem:[%s2208_s10 + $0x170] sm:$0xff] }
  0xc7   : > { %v2505_v21 = vpop.f32.mrf.mxu0  ;;  %681 = vrot.lane.b32.xlu1 %v2424_v29, %s2098_s20  ;;  %553 = vrot.lane.b32.xlu0 %v2431_v30, %s2098_s20  ;;  %s3038_s20 = smov 353  }
  0xc8   : > { %685 = vrot.lane.b32.xlu2 %v2424_v29, %s3037_s9 }
  0xc9   : > { %v602_v24 = vpop.permute.xlu0 %601 }
  0xca   : > { %v606_v35 = vpop.permute.xlu1 %605 }
  0xcb   : > { %v1873_v42 = vpack.c.bf16 %v606_v35, %v602_v24 }
  0xcf   : > { %v2522_v16 = vpop.f32.mrf.mxu0  ;;  %557 = vrot.lane.b32.xlu1 %v2431_v30, %s3037_s9  ;;  %693 = vrot.lane.b32.xlu0 %v2424_v29, %s2101_s19 }
  0xd0   : > { %689 = vrot.lane.b32.xlu2 %v2424_v29, %s3038_s20 }
  0xd1   : > { %v478_v39 = vpop.permute.xlu0 %477 }
  0xd2   : > { %1762 = vmatmul.msk.bf16.gmra.mxu0 %vm947_vm1, %v909_v33  ;;  %v1825_v44 = vpack.c.bf16 %v478_v39, %v474_v38  ;;  %v610_v47 = vpop.permute.xlu1 %609  ;;  %v494_v33 = vpop.permute.xlu2 %493 }
  0xd3   : > { %v1876_v62 = vpack.c.bf16 %v614_v57, %v610_v47  ;;  %v885_v57 = vld [vmem:[%s2208_s10 + $0x198] sm:$0xff] }
  0xd4   : > { %1871 = vmatmul.msk.bf16.gmra.mxu2 %vm2531_vm10, %v1870_v20 }
  0xd5   : > { %1823 = vmatmul.msk.bf16.gmra.mxu1 %vm2531_vm10, %v1822_v22 }
  0xd7   : > { %v2539_v23 = vpop.f32.mrf.mxu0  ;;  %561 = vrot.lane.b32.xlu1 %v2431_v30, %s3038_s20  ;;  %697 = vrot.lane.b32.xlu0 %v2424_v29, %s2102_s22 }
  0xd8   : > { %565 = vrot.lane.b32.xlu2 %v2431_v30, %s2101_s19  ;;  %s303_s19 = sand.u32 1, %s2077_s27  }
  0xd9   : > { %v482_v60 = vpop.permute.xlu0 %481  ;;  %s1738_s21 = sshll.u32 %s303_s19, 9  ;;  %s1631_s24 = scalar_lea.sflag [#allocation4], %s303_s19 }
  0xda   : > { %v486_v61 = vpop.permute.xlu1 %485  ;;  %v498_v39 = vpop.permute.xlu2 %497  ;;  %s2704_s14 = scalar_lea.vmem [#allocation6], %s1738_s21 }
  0xdb   : > { %v1828_v12 = vpack.c.bf16 %v486_v61, %v482_v60  ;;  %v914_v60 = vpack.c.bf16 %v867_v55, %v866_v53  ;;  %s1643_s23 = sshll.u32 %s2704_s14, 4  ;;  %s1644_s23 = int_to_ptr.vmem [resolvable:$true] %s1643_s23 }
  0xdf   : > { %v2556_v37 = vpop.f32.mrf.mxu0  ;;  %701 = vrot.lane.b32.xlu1 %v2424_v29, %s2103_s15  ;;  %573 = vrot.lane.b32.xlu0 %v2431_v30, %s2103_s15 }
  0xe0   : > { %569 = vrot.lane.b32.xlu2 %v2431_v30, %s2102_s22  ;;  %v921_v30 = vpack.c.bf16 %v881_v5, %v880_v3  ;;  %v1142_v5 = vpop.f32.mrf.mxu3  ;;  %s2039_s22 = scalar_lea.hbm %s3009_s7, 1024 }
  0xe1   : > { %v622_v13 = vpop.permute.xlu0 %621 }
  0xe2   : > { %1763 = vmatmul.msk.bf16.gmra.mxu0 %vm947_vm1, %v910_v34  ;;  %1774 = vmatmul.msk.bf16.gmra.mxu3 %vm947_vm1, %v921_v30  ;;  %v490_v15 = vpop.permute.xlu1 %489  ;;  %v1879_v18 = vpack.c.bf16 %v622_v13, %v618_v2  ;;  %v913_v34 = vpack.c.bf16 %v865_v27, %v864_v40 }
  0xe3   : > { %v1831_v20 = vpack.c.bf16 %v494_v33, %v490_v15 }
  0xe4   : > { %1874 = vmatmul.msk.bf16.gmra.mxu2 %vm2565_vm13, %v1873_v42 }
  0xe5   : > { %1826 = vmatmul.msk.bf16.gmra.mxu1 %vm2565_vm13, %v1825_v44 }
  0xe7   : > { %v2573_v45 = vpop.f32.mrf.mxu0 }
  0xe8   : > { %v2675_v9 = vpop.f32.mrf.mxu3 }
  0xe9   : > { %v626_v24 = vpop.permute.xlu0 %625 }
  0xea   : > { %v630_v35 = vpop.permute.xlu1 %629 }
  0xeb   : > { %v1882_v47 = vpack.c.bf16 %v630_v35, %v626_v24 }
  0xef   : > { %v2590_v58 = vpop.f32.mrf.mxu0 }
  0xf0   : > { %v2683_v24 = vpop.f32.mrf.mxu3 }
  0xf1   : > { %v502_v42 = vpop.permute.xlu0 %501 }
  0xf2   : > { %1764 = vmatmul.msk.bf16.gmra.mxu0 %vm947_vm1, %v911_v56  ;;  %1775 = vmatmul.msk.bf16.gmra.mxu3 %vm947_vm1, %v922_v26  ;;  %v1834_v50 = vpack.c.bf16 %v502_v42, %v498_v39  ;;  %v634_v52 = vpop.permute.xlu1 %633  ;;  %v884_v56 = vld [vmem:[%s2208_s10 + $0x190] sm:$0xff] }
  0xf3   : > { %v923_v61 = vpack.c.bf16 %v885_v57, %v884_v56 }
  0xf4   : > { %1877 = vmatmul.msk.bf16.gmra.mxu2 %vm2599_vm0, %v1876_v62  ;;  %v638_v62 = vpop.permute.xlu2 %637 }
  0xf5   : > { %1829 = vmatmul.msk.bf16.gmra.mxu1 %vm2599_vm0, %v1828_v12  ;;  %v1885_v30 = vpack.c.bf16 %v638_v62, %v634_v52 }
  0xf7   : > { %v2605_v0 = vpop.f32.mrf.mxu0 }
  0xf8   : > { %v2702_v42 = vpop.f32.mrf.mxu3 }
  0xf9   : > { %v506_v2 = vpop.permute.xlu0 %505 }
  0xfa   : > { %v510_v3 = vpop.permute.xlu1 %509 }
  0xfb   : > { %v1837_v6 = vpack.c.bf16 %v510_v3, %v506_v2 }
  0xfc   : > { %v642_v43 = vpop.permute.xlu2 %641 }
  0xff   : > { %v2616_v14 = vpop.f32.mrf.mxu0 }
 0x101   : > { %v646_v33 = vpop.permute.xlu0 %645 }
 0x102   : > { %1765 = vmatmul.msk.bf16.gmra.mxu0 %vm947_vm1, %v912_v11  ;;  %1776 = vmatmul.msk.bf16.gmra.mxu3 %vm947_vm1, %v923_v61  ;;  %v887_v11 = vld [vmem:[%s2208_s10 + $0x1a8] sm:$0xff]  ;;  %v1888_v36 = vpack.c.bf16 %v646_v33, %v642_v43  ;;  %v2716_v61 = vpop.f32.mrf.mxu3 }
 0x103   : > { %v924_v13 = vpack.c.bf16 %v887_v11, %v886_v10 }
 0x104   : > { %1880 = vmatmul.msk.bf16.gmra.mxu2 %vm2621_vm5, %v1879_v18  ;;  %v518_v18 = vpop.permute.xlu2 %517 }
 0x105   : > { %1832 = vmatmul.msk.bf16.gmra.mxu1 %vm2621_vm5, %v1831_v20 }
 0x107   : > { %v2627_v22 = vpop.f32.mrf.mxu0 }
 0x109   : > { %v514_v20 = vpop.permute.xlu1 %513  ;;  %v650_v31 = vpop.permute.xlu0 %649 }
 0x10a   : > { %v1840_v26 = vpack.c.bf16 %v518_v18, %v514_v20  ;;  %v2727_v33 = vpop.f32.mrf.mxu3  ;;  %v890_v20 = vld [vmem:[%s2208_s10 + $0x1c0] sm:$0xff] }
 0x10c   : > { %v522_v8 = vpop.permute.xlu2 %521 }
 0x10f   : > { %v2638_v38 = vpop.f32.mrf.mxu0 }
 0x111   : > { %v654_v55 = vpop.permute.xlu1 %653  ;;  %v526_v57 = vpop.permute.xlu0 %525 }
 0x112   : > { %1766 = vmatmul.msk.bf16.gmra.mxu0 %vm947_vm1, %v913_v34  ;;  %1777 = vmatmul.msk.bf16.gmra.mxu3 %vm947_vm1, %v924_v13  ;;  %v1891_v62 = vpack.c.bf16 %v654_v55, %v650_v31 }
 0x114   : > { %1883 = vmatmul.msk.bf16.gmra.mxu2 %vm2643_vm9, %v1882_v47  ;;  %v888_v47 = vld [vmem:[%s2208_s10 + $0x1b0] sm:$0xff] }
 0x115   : > { %1835 = vmatmul.msk.bf16.gmra.mxu1 %vm2643_vm9, %v1834_v50  ;;  %v889_v50 = vld [vmem:[%s2208_s10 + $0x1b8] sm:$0xff] }
 0x116   : > { %v925_v53 = vpack.c.bf16 %v889_v50, %v888_v47 }
 0x117   : > { %v2649_v51 = vpop.f32.mrf.mxu0 }
 0x11f   : > { %v2659_v12 = vpop.f32.mrf.mxu0 }
 0x122   : > { %1767 = vmatmul.msk.bf16.gmra.mxu0 %vm947_vm1, %v914_v60  ;;  %1778 = vmatmul.msk.bf16.gmra.mxu3 %vm947_vm1, %v925_v53 }
 0x124   : > { %1886 = vmatmul.msk.bf16.gmra.mxu2 %vm2665_vm14, %v1885_v30 }
 0x125   : > { %1838 = vmatmul.msk.bf16.gmra.mxu1 %vm2665_vm14, %v1837_v6  ;;  %v658_v6 = vpop.permute.xlu1 %657 }
 0x127   : > { %v2671_v7 = vpop.f32.mrf.mxu0 }
 0x12f   : > { %v2679_v15 = vpop.f32.mrf.mxu0 }
 0x132   : > { %v1274_v40 = vpop.f32.mrf.mxu1 }
 0x133   : > { %v1275_v27 = vadd.f32 %v1274_v40, %v2422_v28 }
 0x134   : > { %1889 = vmatmul.msk.bf16.gmra.mxu2 %vm2463_vm4, %v1888_v36  ;;  %v891_v36 = vld [vmem:[%s2208_s10 + $0x1c8] sm:$0xff] }
 0x135   : > { %v1438_v34 = vadd.f32 %v2688_v25, %v1275_v27  ;;  %1841 = vmatmul.msk.bf16.gmra.mxu1 %vm2463_vm4, %v1840_v26  ;;  %v662_v27 = vpop.permute.xlu2 %661  ;;  %v926_v31 = vpack.c.bf16 %v891_v36, %v890_v20 }
 0x136   : > { %v1894_v53 = vpack.c.bf16 %v662_v27, %v658_v6 }
 0x137   : > { %v2695_v48 = vpop.f32.mrf.mxu0  ;;  %v2700_v35 = vpop.f32.mrf.mxu2  ;;  %v1502_v39 = vmax.f32 %v1438_v34, 0.0  ;;  %1779 = vmatmul.msk.bf16.gmra.mxu3 %vm947_vm1, %v926_v31 }
 0x139   : > { %1566 = vst [vmem:[%s2704_s14] sm:$0xff] %v1502_v39 }
 0x13a   : > { %v1276_v28 = vpop.f32.mrf.mxu1 }
 0x13b   : > { %v1277_v52 = vadd.f32 %v1276_v28, %v2435_v59  ;;  %v1843_v59 = vpack.c.bf16 %v526_v57, %v522_v8  ;;  %v534_v28 = vpop.permute.xlu1 %533 }
 0x13d   : > { %v1439_v49 = vadd.f32 %v2688_v25, %v1277_v52  ;;  %v2740_v52 = vpop.f32.mrf.mxu3 }
 0x13f   : > { %v2710_v4 = vpop.f32.mrf.mxu0  ;;  %v2714_v56 = vpop.f32.mrf.mxu2  ;;  %v1503_v60 = vmax.f32 %v1439_v49, 0.0 }
 0x141   : > { %1567 = vst [vmem:[%s2704_s14 + $0x8] sm:$0xff] %v1503_v60  ;;  %v666_v60 = vpop.permute.xlu2 %665 }
 0x142   : > { %v1279_v2 = vpop.f32.mrf.mxu1 }
 0x143   : > { %v1280_v3 = vadd.f32 %v1279_v2, %v2453_v46 }
 0x144   : > { %1892 = vmatmul.msk.bf16.gmra.mxu2 %vm2497_vm7, %v1891_v62 }
 0x145   : > { %v1440_v43 = vadd.f32 %v2688_v25, %v1280_v3  ;;  %1844 = vmatmul.msk.bf16.gmra.mxu1 %vm2497_vm7, %v1843_v59  ;;  %v2754_v6 = vpop.f32.mrf.mxu3 }
 0x147   : > { %v2722_v30 = vpop.f32.mrf.mxu0  ;;  %v1359_v10 = vpop.f32.mrf.mxu2  ;;  %v1504_v11 = vmax.f32 %v1440_v43, 0.0 }
 0x148   : > { %v1360_v13 = vadd.f32 %v1359_v10, %v1142_v5  ;;  %v530_v5 = vpop.permute.xlu0 %529  ;;  %v892_v10 = vld [vmem:[%s2208_s10 + $0x1d0] sm:$0xff] }
 0x149   : > { %1568 = vst [vmem:[%s2704_s14 + $0x10] sm:$0xff] %v1504_v11  ;;  %v1846_v55 = vpack.c.bf16 %v534_v28, %v530_v5  ;;  %v893_v11 = vld [vmem:[%s2208_s10 + $0x1d8] sm:$0xff] }
 0x14a   : > { %v1472_v46 = vadd.f32 %v2688_v25, %v1360_v13  ;;  %v1281_v18 = vpop.f32.mrf.mxu1 }
 0x14b   : > { %v1282_v40 = vadd.f32 %v1281_v18, %v2471_v54  ;;  %v927_v18 = vpack.c.bf16 %v893_v11, %v892_v10 }
 0x14c   : > { %v1536_v26 = vmax.f32 %v1472_v46, 0.0 }
 0x14d   : > { %v1441_v34 = vadd.f32 %v2688_v25, %v1282_v40  ;;  %1780 = vmatmul.msk.bf16.gmra.mxu3 %vm947_vm1, %v927_v18  ;;  %v538_v40 = vpop.permute.xlu1 %537 }
 0x14e   : > { %1600 = vst [vmem:[%s2704_s14 + $0x110] sm:$0xff] %v1536_v26 }
 0x14f   : > { %v2734_v1 = vpop.f32.mrf.mxu0  ;;  %v1361_v39 = vpop.f32.mrf.mxu2  ;;  %v1505_v47 = vmax.f32 %v1441_v34, 0.0 }
 0x150   : > { %v1362_v50 = vadd.f32 %v1361_v39, %v2675_v9  ;;  %v670_v19 = vpop.permute.xlu0 %669  ;;  %v2767_v34 = vpop.f32.mrf.mxu3 }
 0x151   : > { %1569 = vst [vmem:[%s2704_s14 + $0x18] sm:$0xff] %v1505_v47  ;;  %v1897_v5 = vpack.c.bf16 %v670_v19, %v666_v60 }
 0x152   : > { %v1473_v54 = vadd.f32 %v2688_v25, %v1362_v50  ;;  %v1284_v49 = vpop.f32.mrf.mxu1 }
 0x153   : > { %v1285_v57 = vadd.f32 %v1284_v49, %v2488_v63 }
 0x154   : > { %v1537_v8 = vmax.f32 %v1473_v54, 0.0  ;;  %1895 = vmatmul.msk.bf16.gmra.mxu2 %vm2531_vm10, %v1894_v53 }
 0x155   : > { %v1442_v9 = vadd.f32 %v2688_v25, %v1285_v57  ;;  %1847 = vmatmul.msk.bf16.gmra.mxu1 %vm2531_vm10, %v1846_v55  ;;  %v678_v41 = vpop.permute.xlu1 %677 }
 0x156   : > { %1601 = vst [vmem:[%s2704_s14 + $0x118] sm:$0xff] %v1537_v8 }
 0x157   : > { %v2747_v62 = vpop.f32.mrf.mxu0  ;;  %v1364_v59 = vpop.f32.mrf.mxu2  ;;  %v1506_v2 = vmax.f32 %v1442_v9, 0.0  ;;  %v894_v9 = vld [vmem:[%s2208_s10 + $0x1e0] sm:$0xff] }
 0x158   : > { %v1365_v3 = vadd.f32 %v1364_v59, %v2683_v24  ;;  %v542_v24 = vpop.permute.xlu2 %541  ;;  %v2781_v57 = vpop.f32.mrf.mxu3  ;;  %v895_v59 = vld [vmem:[%s2208_s10 + $0x1e8] sm:$0xff] }
 0x159   : > { %1570 = vst [vmem:[%s2704_s14 + $0x20] sm:$0xff] %v1506_v2  ;;  %v1849_v39 = vpack.c.bf16 %v542_v24, %v538_v40 }
 0x15a   : > { %v1474_v63 = vadd.f32 %v2688_v25, %v1365_v3  ;;  %v1286_v43 = vpop.f32.mrf.mxu1 }
 0x15b   : > { %v1287_v46 = vadd.f32 %v1286_v43, %v2505_v21 }
 0x15c   : > { %v1538_v13 = vmax.f32 %v1474_v63, 0.0  ;;  %v928_v63 = vpack.c.bf16 %v895_v59, %v894_v9 }
 0x15d   : > { %v1443_v36 = vadd.f32 %v2688_v25, %v1287_v46 }
 0x15e   : > { %1602 = vst [vmem:[%s2704_s14 + $0x120] sm:$0xff] %v1538_v13  ;;  %1781 = vmatmul.msk.bf16.gmra.mxu3 %vm947_vm1, %v928_v63 }
 0x15f   : > { %v2761_v20 = vpop.f32.mrf.mxu0  ;;  %v1366_v26 = vpop.f32.mrf.mxu2  ;;  %v1507_v27 = vmax.f32 %v1443_v36, 0.0 }
 0x160   : > { %v1367_v31 = vadd.f32 %v1366_v26, %v2702_v42  ;;  %v674_v42 = vpop.permute.xlu0 %673  ;;  %v2794_v19 = vpop.f32.mrf.mxu3 }
 0x161   : > { %1571 = vst [vmem:[%s2704_s14 + $0x28] sm:$0xff] %v1507_v27  ;;  %v1900_v36 = vpack.c.bf16 %v678_v41, %v674_v42  ;;  %v896_v42 = vld [vmem:[%s2208_s10 + $0x1f0] sm:$0xff] }
 0x162   : > { %v1475_v21 = vadd.f32 %v2688_v25, %v1367_v31  ;;  %v1289_v28 = vpop.f32.mrf.mxu1 }
 0x163   : > { %v1290_v50 = vadd.f32 %v1289_v28, %v2522_v16 }
 0x164   : > { %v1539_v47 = vmax.f32 %v1475_v21, 0.0  ;;  %1898 = vmatmul.msk.bf16.gmra.mxu2 %vm2565_vm13, %v1897_v5 }
 0x165   : > { %v1444_v53 = vadd.f32 %v2688_v25, %v1290_v50  ;;  %1850 = vmatmul.msk.bf16.gmra.mxu1 %vm2565_vm13, %v1849_v39 }
 0x166   : > { %1603 = vst [vmem:[%s2704_s14 + $0x128] sm:$0xff] %v1539_v47 }
 0x167   : > { %v2774_v54 = vpop.f32.mrf.mxu0  ;;  %v1369_v55 = vpop.f32.mrf.mxu2  ;;  %v1508_v49 = vmax.f32 %v1444_v53, 0.0  ;;  %v897_v53 = vld [vmem:[%s2208_s10 + $0x1f8] sm:$0xff]  ;;  %s1925_s10 = sshll.u32 %s2170_s3, 9 }
 0x168   : > { %v1370_v8 = vadd.f32 %v1369_v55, %v2716_v61  ;;  %v546_v61 = vpop.permute.xlu2 %545  ;;  %v550_v13 = vpop.permute.xlu0 %549  ;;  %v929_v29 = vpack.c.bf16 %v897_v53, %v896_v42  ;;  %s1642_s16 = scalar_lea.hbm %s3009_s7, %s1925_s10 }
 0x169   : > { %1572 = vst [vmem:[%s2704_s14 + $0x30] sm:$0xff] %v1508_v49  ;;  %v1852_v24 = vpack.c.bf16 %v550_v13, %v546_v61  ;;  %v2810_v50 = vpop.f32.mrf.mxu3  ;;  %s1645_s3 = sshll.u32 %s1642_s16, 4  ;;  %s1646_s3 = int_to_ptr.hbm [resolvable:$true] %s1645_s3 }
 0x16a   : > { %v1476_v16 = vadd.f32 %v2688_v25, %v1370_v8  ;;  %v1291_v60 = vpop.f32.mrf.mxu1  ;;  %s2033_s25 = sshra.s32 %s1646_s3, 4  ;;  %s2034_s25 = int_to_ptr.hbm [resolvable:$true] %s2033_s25 }
 0x16b   : > { %v1292_v3 = vadd.f32 %v1291_v60, %v2539_v23  ;;  %s2035_s30 = scalar_lea.hbm %s2034_s25, 512  ;;  %p2040_p3 = scmp.lt.s32.totalorder %s2034_s25, %s3009_s7 }
 0x16c   : > { %v1540_v2 = vmax.f32 %v1476_v16, 0.0  ;;  %p2036_p0 = scmp.ne.s32.totalorder %s2034_s25, %s2035_s30  ;;  %p2041_p4 = scmp.lt.s32.totalorder %s2039_s22, %s2035_s30 }
 0x16d   : > { %v1445_v10 = vadd.f32 %v2688_v25, %v1292_v3 }
 0x16e   : > { %1604 = vst [vmem:[%s2704_s14 + $0x130] sm:$0xff] %v1540_v2  ;;  %1782 = vmatmul.msk.bf16.gmra.mxu3 %vm947_vm1, %v929_v29  ;;  %p2037_p1 = pnand %p2036_p0, %p2187_p5  ;;  %p2042_p7 = por %p2041_p4, %p2040_p3 }
 0x16f   : > { %v2788_v43 = vpop.f32.mrf.mxu0  ;;  %v1371_v11 = vpop.f32.mrf.mxu2  ;;  %v1509_v46 = vmax.f32 %v1445_v10, 0.0 }
 0x170   : > { %v1372_v18 = vadd.f32 %v1371_v11, %v2727_v33  ;;  %v682_v33 = vpop.permute.xlu1 %681  ;;  %v686_v8 = vpop.permute.xlu2 %685  ;;  %p2038_p2 = pneg %p2037_p1 }
 0x171   : > { %1573 = vst [vmem:[%s2704_s14 + $0x38] sm:$0xff] %v1509_v46  ;;  %v1903_v63 = vpack.c.bf16 %v686_v8, %v682_v33 }
 0x172   : > { %v1477_v23 = vadd.f32 %v2688_v25, %v1372_v18  ;;  %v1294_v26 = vpop.f32.mrf.mxu1  ;;  %v2828_v18 = vpop.f32.mrf.mxu3  ;;  %p2043_p8 = pnand %p2042_p7, %p2038_p2 }
 0x173   : > { %v1295_v27 = vadd.f32 %v1294_v26, %v2556_v37 }
 0x174   : > { %v1541_v40 = vmax.f32 %v1477_v23, 0.0  ;;  %1901 = vmatmul.msk.bf16.gmra.mxu2 %vm2599_vm0, %v1900_v36 }
 0x175   : > { %v1446_v21 = vadd.f32 %v2688_v25, %v1295_v27  ;;  %1853 = vmatmul.msk.bf16.gmra.mxu1 %vm2599_vm0, %v1852_v24 }
 0x176   : > { %1605 = vst [vmem:[%s2704_s14 + $0x138] sm:$0xff] %v1541_v40 }
 0x177   : > { %v2801_v31 = vpop.f32.mrf.mxu0  ;;  %v1374_v5 = vpop.f32.mrf.mxu2  ;;  %v1510_v39 = vmax.f32 %v1446_v21, 0.0 }
 0x178   : > { %v1375_v28 = vadd.f32 %v1374_v5, %v2740_v52  ;;  %v554_v52 = vpop.permute.xlu0 %553  ;;  %v558_v59 = vpop.permute.xlu1 %557 }
 0x179   : > { %1574 = vst [vmem:[%s2704_s14 + $0x40] sm:$0xff] %v1510_v39  ;;  %v1855_v41 = vpack.c.bf16 %v558_v59, %v554_v52  ;;  %v690_v13 = vpop.permute.xlu2 %689 }
 0x17a   : > { %v1478_v37 = vadd.f32 %v2688_v25, %v1375_v28  ;;  %v1296_v47 = vpop.f32.mrf.mxu1 }
 0x17b   : > { %v1297_v49 = vadd.f32 %v1296_v47, %v2573_v45 }
 0x17c   : > { %v1542_v55 = vmax.f32 %v1478_v37, 0.0  ;;  %v2842_v37 = vpop.f32.mrf.mxu3 }
 0x17d   : > { %v1447_v60 = vadd.f32 %v2688_v25, %v1297_v49 }
 0x17e   : > { %1606 = vst [vmem:[%s2704_s14 + $0x140] sm:$0xff] %v1542_v55 }
 0x17f   : > { %v2815_v16 = vpop.f32.mrf.mxu0  ;;  %v1376_v9 = vpop.f32.mrf.mxu2  ;;  %v1511_v2 = vmax.f32 %v1447_v60, 0.0 }
 0x180   : > { %v1377_v3 = vadd.f32 %v1376_v9, %v2754_v6  ;;  %v694_v33 = vpop.permute.xlu0 %693  ;;  %v562_v39 = vpop.permute.xlu1 %561 }
 0x181   : > { %1575 = vst [vmem:[%s2704_s14 + $0x48] sm:$0xff] %v1511_v2  ;;  %v566_v17 = vpop.permute.xlu2 %565  ;;  %v1906_v42 = vpack.c.bf16 %v694_v33, %v690_v13 }
 0x182   : > { %v1479_v45 = vadd.f32 %v2688_v25, %v1377_v3  ;;  %v1299_v10 = vpop.f32.mrf.mxu1  ;;  %v1858_v53 = vpack.c.bf16 %v566_v17, %v562_v39 }
 0x183   : > { %v1300_v11 = vadd.f32 %v1299_v10, %v2590_v58 }
 0x184   : > { %v1543_v61 = vmax.f32 %v1479_v45, 0.0  ;;  %1904 = vmatmul.msk.bf16.gmra.mxu2 %vm2621_vm5, %v1903_v63  ;;  %v1177_v2 = vpop.f32.mrf.mxu3 }
 0x185   : > { %v1448_v6 = vadd.f32 %v2688_v25, %v1300_v11  ;;  %1856 = vmatmul.msk.bf16.gmra.mxu1 %vm2621_vm5, %v1855_v41 }
 0x186   : > { %1607 = vst [vmem:[%s2704_s14 + $0x148] sm:$0xff] %v1543_v61 }
 0x187   : > { %v2826_v46 = vpop.f32.mrf.mxu0  ;;  %v1379_v23 = vpop.f32.mrf.mxu2  ;;  %v1512_v36 = vmax.f32 %v1448_v6, 0.0 }
 0x188   : > { %v1380_v24 = vadd.f32 %v1379_v23, %v2767_v34  ;;  %v698_v60 = vpop.permute.xlu0 %697  ;;  %v702_v61 = vpop.permute.xlu1 %701 }
 0x189   : > { %1576 = vst [vmem:[%s2704_s14 + $0x50] sm:$0xff] %v1512_v36  ;;  %v570_v11 = vpop.permute.xlu2 %569 }
 0x18a   : > { %v1480_v58 = vadd.f32 %v2688_v25, %v1380_v24  ;;  %v1301_v26 = vpop.f32.mrf.mxu1  ;;  %v1909_v24 = vpack.c.bf16 %v702_v61, %v698_v60 }
 0x18b   : > { %v1302_v27 = vadd.f32 %v1301_v26, %v2605_v0 }
 0x18c   : > { %v1544_v40 = vmax.f32 %v1480_v58, 0.0 }
 0x18d   : > { %v1449_v5 = vadd.f32 %v2688_v25, %v1302_v27  ;;  %v1179_v27 = vpop.f32.mrf.mxu3 }
 0x18e   : > { %1608 = vst [vmem:[%s2704_s14 + $0x150] sm:$0xff] %v1544_v40 }
 0x18f   : > { %v2838_v21 = vpop.f32.mrf.mxu0  ;;  %v1381_v28 = vpop.f32.mrf.mxu2  ;;  %v1513_v34 = vmax.f32 %v1449_v5, 0.0 }
 0x190   : > { %v1382_v47 = vadd.f32 %v1381_v28, %v2781_v57 }
 0x191   : > { %1577 = vst [vmem:[%s2704_s14 + $0x58] sm:$0xff] %v1513_v34 }
 0x192   : > { %v1481_v0 = vadd.f32 %v2688_v25, %v1382_v47  ;;  %v1304_v55 = vpop.f32.mrf.mxu1 }
 0x193   : > { %v1305_v8 = vadd.f32 %v1304_v55, %v2616_v14 }
 0x194   : > { %v1545_v49 = vmax.f32 %v1481_v0, 0.0  ;;  %1907 = vmatmul.msk.bf16.gmra.mxu2 %vm2643_vm9, %v1906_v42 }
 0x195   : > { %v1450_v57 = vadd.f32 %v2688_v25, %v1305_v8  ;;  %1859 = vmatmul.msk.bf16.gmra.mxu1 %vm2643_vm9, %v1858_v53  ;;  %v1182_v55 = vpop.f32.mrf.mxu3 }
 0x196   : > { %1609 = vst [vmem:[%s2704_s14 + $0x158] sm:$0xff] %v1545_v49 }
 0x197   : > { %v2850_v29 = vpop.f32.mrf.mxu0  ;;  %v1384_v52 = vpop.f32.mrf.mxu2  ;;  %v1514_v9 = vmax.f32 %v1450_v57, 0.0 }
 0x198   : > { %v1385_v59 = vadd.f32 %v1384_v52, %v2794_v19  ;;  %v574_v19 = vpop.permute.xlu0 %573 }
 0x199   : > { %1578 = vst [vmem:[%s2704_s14 + $0x60] sm:$0xff] %v1514_v9  ;;  %v1861_v26 = vpack.c.bf16 %v574_v19, %v570_v11 }
 0x19a   : > { %v1482_v14 = vadd.f32 %v2688_v25, %v1385_v59  ;;  %v1306_v3 = vpop.f32.mrf.mxu1 }
 0x19b   : > { %v1307_v45 = vadd.f32 %v1306_v3, %v2627_v22 }
 0x19c   : > { %v1546_v63 = vmax.f32 %v1482_v14, 0.0 }
 0x19d   : > { %v1451_v10 = vadd.f32 %v2688_v25, %v1307_v45  ;;  %v1184_v14 = vpop.f32.mrf.mxu3 }
 0x19e   : > { %1610 = vst [vmem:[%s2704_s14 + $0x160] sm:$0xff] %v1546_v63 }
 0x19f   : > { %v1137_v41 = vpop.f32.mrf.mxu0  ;;  %v1386_v13 = vpop.f32.mrf.mxu2  ;;  %v1515_v6 = vmax.f32 %v1451_v10, 0.0 }
 0x1a0   : > { %v1355_v44 = vadd.f32 %v2700_v35, %v1137_v41  ;;  %v1387_v23 = vadd.f32 %v1386_v13, %v2810_v50 }
 0x1a1   : > { %1579 = vst [vmem:[%s2704_s14 + $0x68] sm:$0xff] %v1515_v6 }
 0x1a2   : > { %v1470_v36 = vadd.f32 %v2688_v25, %v1355_v44  ;;  %v1483_v22 = vadd.f32 %v2688_v25, %v1387_v23  ;;  %v1309_v40 = vpop.f32.mrf.mxu1 }
 0x1a3   : > { %v1310_v35 = vadd.f32 %v1309_v40, %v2638_v38 }
 0x1a4   : > { %v1534_v58 = vmax.f32 %v1470_v36, 0.0  ;;  %v1547_v33 = vmax.f32 %v1483_v22, 0.0  ;;  %1910 = vmatmul.msk.bf16.gmra.mxu2 %vm2665_vm14, %v1909_v24 }
 0x1a5   : > { %v1452_v5 = vadd.f32 %v2688_v25, %v1310_v35  ;;  %1862 = vmatmul.msk.bf16.gmra.mxu1 %vm2665_vm14, %v1861_v26  ;;  %v1187_v13 = vpop.f32.mrf.mxu3 }
 0x1a6   : > { %1598 = vst [vmem:[%s2704_s14 + $0x100] sm:$0xff] %v1534_v58 }
 0x1a7   : > { %v1139_v50 = vpop.f32.mrf.mxu0  ;;  %1611 = vst [vmem:[%s2704_s14 + $0x168] sm:$0xff] %v1547_v33  ;;  %v1389_v39 = vpop.f32.mrf.mxu2  ;;  %v1516_v28 = vmax.f32 %v1452_v5, 0.0 }
 0x1a8   : > { %v1357_v17 = vadd.f32 %v2714_v56, %v1139_v50  ;;  %v1390_v34 = vadd.f32 %v1389_v39, %v2828_v18 }
 0x1a9   : > { %1580 = vst [vmem:[%s2704_s14 + $0x70] sm:$0xff] %v1516_v28 }
 0x1aa   : > { %v1471_v38 = vadd.f32 %v2688_v25, %v1357_v17  ;;  %v1484_v47 = vadd.f32 %v2688_v25, %v1390_v34  ;;  %v1311_v0 = vpop.f32.mrf.mxu1 }
 0x1ab   : > { %v1312_v32 = vadd.f32 %v1311_v0, %v2649_v51 }
 0x1ac   : > { %v1535_v42 = vmax.f32 %v1471_v38, 0.0  ;;  %v1548_v53 = vmax.f32 %v1484_v47, 0.0 }
 0x1ad   : > { %v1453_v56 = vadd.f32 %v2688_v25, %v1312_v32  ;;  %v1189_v40 = vpop.f32.mrf.mxu3 }
 0x1ae   : > { %1599 = vst [vmem:[%s2704_s14 + $0x108] sm:$0xff] %v1535_v42 }
 0x1af   : > { %1612 = vst [vmem:[%s2704_s14 + $0x170] sm:$0xff] %v1548_v53  ;;  %v1391_v49 = vpop.f32.mrf.mxu2  ;;  %v1517_v8 = vmax.f32 %v1453_v56, 0.0 }
 0x1b0   : > { %v1392_v18 = vadd.f32 %v1391_v49, %v2842_v37 }
 0x1b1   : > { %1581 = vst [vmem:[%s2704_s14 + $0x78] sm:$0xff] %v1517_v8 }
 0x1b2   : > { %v1485_v60 = vadd.f32 %v2688_v25, %v1392_v18  ;;  %v1314_v57 = vpop.f32.mrf.mxu1 }
 0x1b3   : > { %v1315_v9 = vadd.f32 %v1314_v57, %v2659_v12 }
 0x1b4   : > { %v1549_v52 = vmax.f32 %v1485_v60, 0.0 }
 0x1b5   : > { %v1454_v51 = vadd.f32 %v2688_v25, %v1315_v9  ;;  %v1192_v38 = vpop.f32.mrf.mxu3 }
 0x1b6   : > { %1613 = vst [vmem:[%s2704_s14 + $0x178] sm:$0xff] %v1549_v52 }
 0x1b7   : > { %v1394_v59 = vpop.f32.mrf.mxu2  ;;  %v1518_v3 = vmax.f32 %v1454_v51, 0.0 }
 0x1b8   : > { %v1395_v63 = vadd.f32 %v1394_v59, %v1177_v2 }
 0x1b9   : > { %1582 = vst [vmem:[%s2704_s14 + $0x80] sm:$0xff] %v1518_v3 }
 0x1ba   : > { %v1486_v37 = vadd.f32 %v2688_v25, %v1395_v63  ;;  %v1316_v45 = vpop.f32.mrf.mxu1 }
 0x1bb   : > { %v1317_v10 = vadd.f32 %v1316_v45, %v2671_v7 }
 0x1bc   : > { %v1550_v41 = vmax.f32 %v1486_v37, 0.0 }
 0x1bd   : > { %v1455_v12 = vadd.f32 %v2688_v25, %v1317_v10  ;;  %v1194_v8 = vpop.f32.mrf.mxu3 }
 0x1be   : > { %1614 = vst [vmem:[%s2704_s14 + $0x180] sm:$0xff] %v1550_v41 }
 0x1bf   : > { %v1396_v61 = vpop.f32.mrf.mxu2  ;;  %v1519_v44 = vmax.f32 %v1455_v12, 0.0 }
 0x1c0   : > { %v1397_v11 = vadd.f32 %v1396_v61, %v1179_v27 }
 0x1c1   : > { %1583 = vst [vmem:[%s2704_s14 + $0x88] sm:$0xff] %v1519_v44 }
 0x1c2   : > { %v1487_v2 = vadd.f32 %v2688_v25, %v1397_v11  ;;  %v1319_v19 = vpop.f32.mrf.mxu1 }
 0x1c3   : > { %v1320_v23 = vadd.f32 %v1319_v19, %v2679_v15 }
 0x1c4   : > { %v1551_v6 = vmax.f32 %v1487_v2, 0.0 }
 0x1c5   : > { %v1456_v7 = vadd.f32 %v2688_v25, %v1320_v23  ;;  %v1197_v63 = vpop.f32.mrf.mxu3 }
 0x1c6   : > { %1615 = vst [vmem:[%s2704_s14 + $0x188] sm:$0xff] %v1551_v6 }
 0x1c7   : > { %v1399_v36 = vpop.f32.mrf.mxu2  ;;  %v1520_v22 = vmax.f32 %v1456_v7, 0.0 }
 0x1c8   : > { %v1400_v24 = vadd.f32 %v1399_v36, %v1182_v55 }
 0x1c9   : > { %1584 = vst [vmem:[%s2704_s14 + $0x90] sm:$0xff] %v1520_v22 }
 0x1ca   : > { %v1488_v58 = vadd.f32 %v2688_v25, %v1400_v24  ;;  %v1321_v26 = vpop.f32.mrf.mxu1 }
 0x1cb   : > { %v1322_v33 = vadd.f32 %v1321_v26, %v2695_v48 }
 0x1cc   : > { %v1552_v27 = vmax.f32 %v1488_v58, 0.0 }
 0x1cd   : > { %v1457_v15 = vadd.f32 %v2688_v25, %v1322_v33  ;;  %v1199_v2 = vpop.f32.mrf.mxu3 }
 0x1ce   : > { %1616 = vst [vmem:[%s2704_s14 + $0x190] sm:$0xff] %v1552_v27 }
 0x1cf   : > { %v1401_v35 = vpop.f32.mrf.mxu2  ;;  %v1521_v50 = vmax.f32 %v1457_v15, 0.0 }
 0x1d0   : > { %v1402_v5 = vadd.f32 %v1401_v35, %v1184_v14 }
 0x1d1   : > { %1585 = vst [vmem:[%s2704_s14 + $0x98] sm:$0xff] %v1521_v50 }
 0x1d2   : > { %v1489_v17 = vadd.f32 %v2688_v25, %v1402_v5  ;;  %v1324_v39 = vpop.f32.mrf.mxu1 }
 0x1d3   : > { %v1325_v34 = vadd.f32 %v1324_v39, %v2710_v4 }
 0x1d4   : > { %v1553_v28 = vmax.f32 %v1489_v17, 0.0 }
 0x1d5   : > { %v1458_v48 = vadd.f32 %v2688_v25, %v1325_v34 }
 0x1d6   : > { %1617 = vst [vmem:[%s2704_s14 + $0x198] sm:$0xff] %v1553_v28 }
 0x1d7   : > { %v1404_v47 = vpop.f32.mrf.mxu2  ;;  %v1522_v42 = vmax.f32 %v1458_v48, 0.0 }
 0x1d8   : > { %v1405_v0 = vadd.f32 %v1404_v47, %v1187_v13 }
 0x1d9   : > { %1586 = vst [vmem:[%s2704_s14 + $0xa0] sm:$0xff] %v1522_v42 }
 0x1da   : > { %v1490_v53 = vadd.f32 %v2688_v25, %v1405_v0  ;;  %v1326_v32 = vpop.f32.mrf.mxu1 }
 0x1db   : > { %v1327_v56 = vadd.f32 %v1326_v32, %v2722_v30 }
 0x1dc   : > { %v1554_v55 = vmax.f32 %v1490_v53, 0.0 }
 0x1dd   : > { %v1459_v49 = vadd.f32 %v2688_v25, %v1327_v56 }
 0x1de   : > { %1618 = vst [vmem:[%s2704_s14 + $0x1a0] sm:$0xff] %v1554_v55 }
 0x1df   : > { %v1406_v4 = vpop.f32.mrf.mxu2  ;;  %v1523_v18 = vmax.f32 %v1459_v49, 0.0 }
 0x1e0   : > { %v1407_v60 = vadd.f32 %v1406_v4, %v1189_v40  ;;  %v1202_v40 = vpop.f32.mrf.mxu3 }
 0x1e1   : > { %1587 = vst [vmem:[%s2704_s14 + $0xa8] sm:$0xff] %v1523_v18 }
 0x1e2   : > { %v1491_v57 = vadd.f32 %v2688_v25, %v1407_v60  ;;  %v1329_v52 = vpop.f32.mrf.mxu1 }
 0x1e3   : > { %v1330_v51 = vadd.f32 %v1329_v52, %v2734_v1 }
 0x1e4   : > { %v1555_v9 = vmax.f32 %v1491_v57, 0.0 }
 0x1e5   : > { %v1460_v30 = vadd.f32 %v2688_v25, %v1330_v51 }
 0x1e6   : > { %1619 = vst [vmem:[%s2704_s14 + $0x1a8] sm:$0xff] %v1555_v9 }
 0x1e7   : > { %v1409_v59 = vpop.f32.mrf.mxu2  ;;  %v1524_v14 = vmax.f32 %v1460_v30, 0.0 }
 0x1e8   : > { %v1410_v3 = vadd.f32 %v1409_v59, %v1192_v38 }
 0x1e9   : > { %1588 = vst [vmem:[%s2704_s14 + $0xb0] sm:$0xff] %v1524_v14 }
 0x1ea   : > { %v1492_v37 = vadd.f32 %v2688_v25, %v1410_v3  ;;  %v1331_v45 = vpop.f32.mrf.mxu1 }
 0x1eb   : > { %v1332_v10 = vadd.f32 %v1331_v45, %v2747_v62 }
 0x1ec   : > { %v1556_v41 = vmax.f32 %v1492_v37, 0.0 }
 0x1ed   : > { %v1461_v1 = vadd.f32 %v2688_v25, %v1332_v10 }
 0x1ee   : > { %1620 = vst [vmem:[%s2704_s14 + $0x1b0] sm:$0xff] %v1556_v41 }
 0x1ef   : > { %v1411_v12 = vpop.f32.mrf.mxu2  ;;  %v1525_v61 = vmax.f32 %v1461_v1, 0.0 }
 0x1f0   : > { %v1412_v44 = vadd.f32 %v1411_v12, %v1194_v8 }
 0x1f1   : > { %1589 = vst [vmem:[%s2704_s14 + $0xb8] sm:$0xff] %v1525_v61 }
 0x1f2   : > { %v1493_v11 = vadd.f32 %v2688_v25, %v1412_v44  ;;  %v1334_v13 = vpop.f32.mrf.mxu1 }
 0x1f3   : > { %v1335_v6 = vadd.f32 %v1334_v13, %v2761_v20 }
 0x1f4   : > { %v1557_v19 = vmax.f32 %v1493_v11, 0.0 }
 0x1f5   : > { %v1462_v62 = vadd.f32 %v2688_v25, %v1335_v6 }
 0x1f6   : > { %1621 = vst [vmem:[%s2704_s14 + $0x1b8] sm:$0xff] %v1557_v19 }
 0x1f7   : > { %v1414_v23 = vpop.f32.mrf.mxu2  ;;  %v1526_v7 = vmax.f32 %v1462_v62, 0.0 }
 0x1f8   : > { %v1415_v36 = vadd.f32 %v1414_v23, %v1197_v63 }
 0x1f9   : > { %1590 = vst [vmem:[%s2704_s14 + $0xc0] sm:$0xff] %v1526_v7 }
 0x1fa   : > { %v1494_v22 = vadd.f32 %v2688_v25, %v1415_v36  ;;  %v1336_v24 = vpop.f32.mrf.mxu1 }
 0x1fb   : > { %v1337_v26 = vadd.f32 %v1336_v24, %v2774_v54  ;;  %v1204_v54 = vpop.f32.mrf.mxu3 }
 0x1fc   : > { %v1558_v58 = vmax.f32 %v1494_v22, 0.0 }
 0x1fd   : > { %v1463_v20 = vadd.f32 %v2688_v25, %v1337_v26 }
 0x1fe   : > { %1622 = vst [vmem:[%s2704_s14 + $0x1c0] sm:$0xff] %v1558_v58 }
 0x1ff   : > { %v1416_v27 = vpop.f32.mrf.mxu2  ;;  %v1527_v33 = vmax.f32 %v1463_v20, 0.0 }
 0x200   : > { %v1417_v15 = vadd.f32 %v1416_v27, %v1199_v2 }
 0x201   : > { %1591 = vst [vmem:[%s2704_s14 + $0xc8] sm:$0xff] %v1527_v33 }
 0x202   : > { %v1495_v35 = vadd.f32 %v2688_v25, %v1417_v15  ;;  %v1339_v50 = vpop.f32.mrf.mxu1 }
 0x203   : > { %v1340_v17 = vadd.f32 %v1339_v50, %v2788_v43  ;;  %v1207_v56 = vpop.f32.mrf.mxu3 }
 0x204   : > { %v1559_v5 = vmax.f32 %v1495_v35, 0.0 }
 0x205   : > { %v1464_v39 = vadd.f32 %v2688_v25, %v1340_v17 }
 0x206   : > { %1623 = vst [vmem:[%s2704_s14 + $0x1c8] sm:$0xff] %v1559_v5 }
 0x207   : > { %v1419_v28 = vpop.f32.mrf.mxu2  ;;  %v1528_v34 = vmax.f32 %v1464_v39, 0.0 }
 0x208   : > { %v1420_v38 = vadd.f32 %v1419_v28, %v1202_v40 }
 0x209   : > { %1592 = vst [vmem:[%s2704_s14 + $0xd0] sm:$0xff] %v1528_v34 }
 0x20a   : > { %v1496_v48 = vadd.f32 %v2688_v25, %v1420_v38  ;;  %v1341_v47 = vpop.f32.mrf.mxu1 }
 0x20b   : > { %v1342_v0 = vadd.f32 %v1341_v47, %v2801_v31  ;;  %v1209_v51 = vpop.f32.mrf.mxu3 }
 0x20c   : > { %v1560_v42 = vmax.f32 %v1496_v48, 0.0 }
 0x20d   : > { %v1465_v43 = vadd.f32 %v2688_v25, %v1342_v0 }
 0x20e   : > { %1624 = vst [vmem:[%s2704_s14 + $0x1d0] sm:$0xff] %v1560_v42 }
 0x20f   : > { %v1421_v53 = vpop.f32.mrf.mxu2  ;;  %v1529_v32 = vmax.f32 %v1465_v43, 0.0 }
 0x210   : > { %v1422_v55 = vadd.f32 %v1421_v53, %v1204_v54 }
 0x211   : > { %1593 = vst [vmem:[%s2704_s14 + $0xd8] sm:$0xff] %v1529_v32 }
 0x212   : > { %v1497_v49 = vadd.f32 %v2688_v25, %v1422_v55  ;;  %v1344_v4 = vpop.f32.mrf.mxu1 }
 0x213   : > { %v1345_v18 = vadd.f32 %v1344_v4, %v2815_v16  ;;  %v1212_v12 = vpop.f32.mrf.mxu3 }
 0x214   : > { %v1561_v8 = vmax.f32 %v1497_v49, 0.0 }
 0x215   : > { %v1466_v31 = vadd.f32 %v2688_v25, %v1345_v18 }
 0x216   : > { %1625 = vst [vmem:[%s2704_s14 + $0x1d8] sm:$0xff] %v1561_v8 }
 0x217   : > { %v1424_v60 = vpop.f32.mrf.mxu2  ;;  %v1530_v57 = vmax.f32 %v1466_v31, 0.0 }
 0x218   : > { %v1425_v52 = vadd.f32 %v1424_v60, %v1207_v56 }
 0x219   : > { %1594 = vst [vmem:[%s2704_s14 + $0xe0] sm:$0xff] %v1530_v57 }
 0x21a   : > { %v1498_v9 = vadd.f32 %v2688_v25, %v1425_v52  ;;  %v1346_v30 = vpop.f32.mrf.mxu1 }
 0x21b   : > { %v1347_v14 = vadd.f32 %v1346_v30, %v2826_v46  ;;  %v1214_v62 = vpop.f32.mrf.mxu3 }
 0x21c   : > { %v1562_v59 = vmax.f32 %v1498_v9, 0.0 }
 0x21d   : > { %v1467_v16 = vadd.f32 %v2688_v25, %v1347_v14 }
 0x21e   : > { %1626 = vst [vmem:[%s2704_s14 + $0x1e0] sm:$0xff] %v1562_v59 }
 0x21f   : > { %v1426_v3 = vpop.f32.mrf.mxu2  ;;  %v1531_v63 = vmax.f32 %v1467_v16, 0.0 }
 0x220   : > { %v1427_v37 = vadd.f32 %v1426_v3, %v1209_v51 }
 0x221   : > { %1595 = vst [vmem:[%s2704_s14 + $0xe8] sm:$0xff] %v1531_v63 }
 0x222   : > { %v1499_v45 = vadd.f32 %v2688_v25, %v1427_v37  ;;  %v1349_v41 = vpop.f32.mrf.mxu1 }
 0x223   : > { %v1350_v1 = vadd.f32 %v1349_v41, %v2838_v21 }
 0x224   : > { %v1563_v10 = vmax.f32 %v1499_v45, 0.0 }
 0x225   : > { %v1468_v46 = vadd.f32 %v2688_v25, %v1350_v1 }
 0x226   : > { %1627 = vst [vmem:[%s2704_s14 + $0x1e8] sm:$0xff] %v1563_v10 }
 0x227   : > { %v1429_v61 = vpop.f32.mrf.mxu2  ;;  %v1532_v44 = vmax.f32 %v1468_v46, 0.0 }
 0x228   : > { %v1430_v11 = vadd.f32 %v1429_v61, %v1212_v12 }
 0x229   : > { %1596 = vst [vmem:[%s2704_s14 + $0xf0] sm:$0xff] %v1532_v44 }
 0x22a   : > { %v1500_v13 = vadd.f32 %v2688_v25, %v1430_v11  ;;  %v1351_v2 = vpop.f32.mrf.mxu1 }
 0x22b   : > { %v1352_v6 = vadd.f32 %v1351_v2, %v2850_v29 }
 0x22c   : > { %v1564_v19 = vmax.f32 %v1500_v13, 0.0 }
 0x22d   : > { %v1469_v21 = vadd.f32 %v2688_v25, %v1352_v6 }
 0x22e   : > { %1628 = vst [vmem:[%s2704_s14 + $0x1f0] sm:$0xff] %v1564_v19 }
 0x22f   : > { %v1431_v23 = vpop.f32.mrf.mxu2  ;;  %v1533_v7 = vmax.f32 %v1469_v21, 0.0 }
 0x230   : > { %v1432_v36 = vadd.f32 %v1431_v23, %v1214_v62 }
 0x231   : > { %1597 = vst [vmem:[%s2704_s14 + $0xf8] sm:$0xff] %v1533_v7 }
 0x232   : > { %v1501_v22 = vadd.f32 %v2688_v25, %v1432_v36 }
 0x234   : > { %v1565_v29 = vmax.f32 %v1501_v22, 0.0 }
 0x236   : > { %1629 = vst [vmem:[%s2704_s14 + $0x1f8] sm:$0xff] %v1565_v29 }
 0x237   : > { %2046 = shalt.err (!%p2043_p8)
}
 0x238   : > { %s2104_s19 = smov 128   ;;  %s2105_s14 = smov 8  }
 0x239   : > { %1939 = dma.vmem_to_hbm [thread:$0]  (%p2187_p5), %s1644_s23, 8192, %s1646_s3, %s1631_s24, %s2104_s19, %s2104_s19, %s2105_s14  }
 0x23a PF: > { %p1951_p9 = scmp.ge.s32.totalorder %s2085_s29, 2  ;;  %s1660_s10 = sand.u32 1, %s2073_s26  }
 0x23b   : > { %s1661_s17 = scalar_lea.sflag [#allocation4], %s1660_s10 }
 0x23c   : > { %p1946_p10 = pnand %p1951_p9, %p2191_p6 }
 0x23e   : > { %p1947_p11 = pneg %p1946_p10 }
 0x240   : > { %2068 = dma.done.wait (%p1947_p11), %s1661_s17, 8192  }
 0x241   : > { %2070 = vsyncadd (%p1947_p11), %s1661_s17, 4294959104  ;;  %p19_p12 = scmp.ge.s32.totalorder %s2174_s8, 4   ;;  %s3049_s26 = smov %s2077_s27 }
 0x242   : > { %s3050_s27 = smov %s2081_s28  ;;  %s3051_s28 = smov %s2185_s11 }
 0x243   : > { %s3052_s29 = smov %s2174_s8  ;;  %21 = sbr.rel (!%p19_p12) target bundleno = 6 (0x6), region = 91 }
 0x248   :  { %1667 = vsyncpa [#allocation4], 1 }
 0x249   :  { %1669 = vsyncpa [#allocation4 + $0x1], 1 }
 0x24a   :  { %1670 = vsyncpa [#allocation5], 1 }
 0x24b   :  { %1672 = vsyncpa [#allocation5 + $0x1], 1 }

</bundles_post_ra>
